<compile_context>
chip_gen: v7x
topology: tpu7x:2x2x1
jax: 0.10.0
libtpu: 0.0.40
codegen_flags: <defaults>
</compile_context>

<pallas_src>
import functools

import jax
import jax.numpy as jnp
from jax.experimental import pallas as pl
from jax.experimental.pallas import tpu as pltpu

_EPS = 1e-5
_LANE = 128


def _round_up(n, m):
  return (n + m - 1) // m * m


# --------------------------------- fused kernel -------------------------------

def _dpcnn_kernel(x_ref, wr_ref, br_ref, wdc_ref, bdc_ref, sdc_ref, tdc_ref,
                  wl_ref, bl_ref, o_ref, pad_ref):
  """Whole DPCNN conv path for one batch tile (Bt sequences), VMEM-resident.

  x_ref   : [Bt, L0, h_pad]  bf16  channels-last region-embedding input
  pad_ref : [Bt, L0+2, cw]   f32   persistent zero-padded activation scratch
                                   (rows 0 / L+1 are the conv & maxpool pads)
  o_ref   : [Bt, n_pad]      f32   logits
  """
  Bt, L0, h_pad = x_ref.shape
  cw = pad_ref.shape[-1]
  c_pad = wr_ref.shape[-1]
  n_dc = wdc_ref.shape[0]          # 1 conv_block + number of resnet blocks

  zero_row = jnp.zeros((Bt, 1, cw), jnp.float32)
  pad_ref[:, 0:1, :] = zero_row                 # top pad row: zero forever
  pad_ref[:, L0 + 1:L0 + 2, :] = zero_row       # bottom pad row for length L0

  def conv3(h, L, cin, w3, b):
    """Conv1d(kernel=3, padding=1) over Bt sequences as ONE MXU matmul.

    h: [Bt, L, cin] f32, w3: [3*cin, cout] bf16, b: [1, cout] f32.
    h is staged into rows 1..L of pad_ref (rows 0 and L+1 are zero); the three
    shifted taps are stacked along lanes -> [Bt*L, 3*cin] @ [3*cin, cout].
    """
    pad_ref[:, 1:L + 1, 0:cin] = h
    t0 = pad_ref[:, 0:L, 0:cin].astype(jnp.bfloat16)         # rows l-1
    t1 = h.astype(jnp.bfloat16)                               # rows l
    t2 = pad_ref[:, 2:L + 2, 0:cin].astype(jnp.bfloat16)     # rows l+1
    win = jnp.concatenate([t0, t1, t2], axis=-1).reshape(Bt * L, 3 * cin)
    out = jnp.dot(win, w3, preferred_element_type=jnp.float32) + b
    return out.reshape(Bt, L, out.shape[-1])

  def double_conv(g, i, L):
    # BN -> ReLU -> Conv -> BN -> ReLU -> Conv  (eval-mode BN as affine)
    g = jnp.maximum(g * sdc_ref[i, 0] + tdc_ref[i, 0], 0.0)
    g = conv3(g, L, c_pad, wdc_ref[i, 0], bdc_ref[i, 0])
    g = jnp.maximum(g * sdc_ref[i, 1] + tdc_ref[i, 1], 0.0)
    g = conv3(g, L, c_pad, wdc_ref[i, 1], bdc_ref[i, 1])
    return g

  # ---- region embedding: Conv (BN folded into w/b at prep time) -> ReLU ----
  L = L0
  h = jnp.maximum(
      conv3(x_ref[...].astype(jnp.float32), L, h_pad, wr_ref[...], br_ref[...]),
      0.0)

  # ---- conv_block (no residual) ----
  h = double_conv(h, 0, L)

  # ---- resnet blocks: [ConstantPad1d((0,1)) + MaxPool1d(3,2)] shortcut ----
  for i in range(1, n_dc):
    l_out = (L - 2) // 2 + 1
    # Stage h in the padded scratch; row L+1 is already zero = the (0,1) pad.
    pad_ref[:, 1:L + 1, 0:c_pad] = h
    x0 = pad_ref[:, pl.ds(1, l_out, stride=2), 0:c_pad]
    x1 = pad_ref[:, pl.ds(2, l_out, stride=2), 0:c_pad]
    x2 = pad_ref[:, pl.ds(3, l_out, stride=2), 0:c_pad]
    sc = jnp.maximum(jnp.maximum(x0, x1), x2)          # [Bt, l_out, c_pad]
    L = l_out
    pad_ref[:, L + 1:L + 2, :] = zero_row              # pad row for new length
    h = double_conv(sc, i, L) + sc                     # residual add (f32)

  # ---- linear_out: ONE matmul over the l-major flatten of [L_f, C] ----
  flat = jnp.concatenate([h[:, l, :] for l in range(L)],
                         axis=-1).astype(jnp.bfloat16)       # [Bt, L_f*c_pad]
  o_ref[...] = (jnp.dot(flat, wl_ref[...], preferred_element_type=jnp.float32)
                + bl_ref[...])


# ------------------------------ pallas wrapper --------------------------------

def _dpcnn_pallas_call(x_pad, kp, *, block_b=8):
  B, L0, h_pad = x_pad.shape
  c_pad = kp["wdc"].shape[-1]
  n_pad = kp["bl"].shape[-1]
  cw = max(h_pad, c_pad)

  block_b = min(block_b, B)
  b_pad = _round_up(B, block_b)
  if b_pad != B:
    x_pad = jnp.pad(x_pad, ((0, b_pad - B), (0, 0), (0, 0)))
  grid = (b_pad // block_b,)

  # sanity: final sequence length must match the packed linear weight
  l = L0
  for _ in range(kp["wdc"].shape[0] - 1):
    l = (l - 2) // 2 + 1
  assert l * c_pad == kp["wl"].shape[0], (l, c_pad, kp["wl"].shape)

  def full(arr):
    nd = arr.ndim
    return pl.BlockSpec(arr.shape, lambda i, _nd=nd: (0,) * _nd)

  out = pl.pallas_call(
      _dpcnn_kernel,
      out_shape=jax.ShapeDtypeStruct((b_pad, n_pad), jnp.float32),
      grid=grid,
      in_specs=[
          pl.BlockSpec((block_b, L0, h_pad), lambda i: (i, 0, 0)),
          full(kp["wr"]), full(kp["br"]),
          full(kp["wdc"]), full(kp["bdc"]), full(kp["sdc"]), full(kp["tdc"]),
          full(kp["wl"]), full(kp["bl"]),
      ],
      out_specs=pl.BlockSpec((block_b, n_pad), lambda i: (i, 0)),
      scratch_shapes=[
          pltpu.VMEM((block_b, L0 + 2, cw), jnp.float32),  # padded act scratch
      ],
      compiler_params=pltpu.CompilerParams(
          dimension_semantics=("parallel",),       # v7x: 2 TCs split the batch
          vmem_limit_bytes=32 * 1024 * 1024),
  )(x_pad, kp["wr"], kp["br"], kp["wdc"], kp["bdc"], kp["sdc"], kp["tdc"],
    kp["wl"], kp["bl"])
  return out[:B]


# ------------------------------ parameters ------------------------------------

def init_params(key, *, vocab, hidden, channels, seq_len, num_labels):
  """Logical (unpadded) parameters mirroring the PyTorch module."""
  ks = iter(jax.random.split(key, 128))

  def normal(shape, scale=0.05):
    return scale * jax.random.normal(next(ks), shape, dtype=jnp.float32)

  def bn(c):
    gamma = 1.0 + 0.1 * jax.random.normal(next(ks), (c,), jnp.float32)
    beta = 0.1 * jax.random.normal(next(ks), (c,), jnp.float32)
    mean = 0.1 * jax.random.normal(next(ks), (c,), jnp.float32)
    var = 1.0 + 0.1 * jax.random.uniform(next(ks), (c,), jnp.float32)
    scale = gamma / jnp.sqrt(var + _EPS)
    shift = beta - mean * scale
    return scale, shift

  def conv(cin, cout):
    # stored as [K=3, Cin, Cout] == torch_weight.permute(2, 1, 0)
    return normal((3, cin, cout)), normal((cout,))

  def double_conv():
    w1, b1 = conv(channels, channels); s1, t1 = bn(channels)
    w2, b2 = conv(channels, channels); s2, t2 = bn(channels)
    return dict(w1=w1, b1=b1, s1=s1, t1=t1, w2=w2, b2=b2, s2=s2, t2=t2)

  p = {}
  p["word_emb"] = normal((vocab, hidden), 0.5)
  p["seg_emb"] = normal((2, hidden), 0.5)
  rw, rb = conv(hidden, channels); rs, rt = bn(channels)
  p["region"] = dict(w=rw, b=rb, s=rs, t=rt)
  p["conv_block"] = double_conv()

  blocks = []
  sl = seq_len
  while sl > 2:                          # same loop as DPCNN.__init__
    blocks.append(double_conv())
    sl //= 2
  p["resnet_blocks"] = blocks
  p["lin_w"] = normal((sl * channels, num_labels))
  p["lin_b"] = normal((num_labels,))
  p["dims"] = dict(hidden=hidden, channels=channels, num_labels=num_labels,
                   l_final=sl)
  return p


def prepare_params(p):
  """Fold the region BN into its conv, pad channels/labels to lane width,
  pack per-block weights into stacked bf16 tensors for the fused kernel."""
  d = p["dims"]
  hidden, channels = d["hidden"], d["channels"]
  num_labels, l_final = d["num_labels"], d["l_final"]
  h_pad = _round_up(hidden, _LANE)
  c_pad = _round_up(channels, _LANE)
  n_pad = _round_up(num_labels, _LANE)

  def pad_conv_w(w, cin, cin_p, cout, cout_p):
    wp = jnp.zeros((3, cin_p, cout_p), jnp.float32).at[:, :cin, :cout].set(w)
    return wp.reshape(3 * cin_p, cout_p).astype(jnp.bfloat16)

  def pad_vec(v, n, n_p):
    return jnp.zeros((1, n_p), jnp.float32).at[:, :n].set(v.reshape(1, n))

  # region: Conv -> BN -> ReLU  ==>  fold the BN affine into the conv.
  r = p["region"]
  w_fold = r["w"] * r["s"][None, None, :]
  b_fold = r["b"] * r["s"] + r["t"]
  wr = pad_conv_w(w_fold, hidden, h_pad, channels, c_pad)
  br = pad_vec(b_fold, channels, c_pad)

  dcs = [p["conv_block"]] + list(p["resnet_blocks"])
  wdc, bdc, sdc, tdc = [], [], [], []
  for dc in dcs:
    wdc.append(jnp.stack([pad_conv_w(dc["w1"], channels, c_pad, channels, c_pad),
                          pad_conv_w(dc["w2"], channels, c_pad, channels, c_pad)]))
    bdc.append(jnp.stack([pad_vec(dc["b1"], channels, c_pad),
                          pad_vec(dc["b2"], channels, c_pad)]))
    sdc.append(jnp.stack([pad_vec(dc["s1"], channels, c_pad),
                          pad_vec(dc["s2"], channels, c_pad)]))
    tdc.append(jnp.stack([pad_vec(dc["t1"], channels, c_pad),
                          pad_vec(dc["t2"], channels, c_pad)]))

  # linear: logical [l_final*channels, num_labels] -> flat [l_final*c_pad, n_pad]
  wl = p["lin_w"].reshape(l_final, channels, num_labels)
  wlp = (jnp.zeros((l_final, c_pad, n_pad), jnp.float32)
         .at[:, :channels, :num_labels].set(wl)
         .reshape(l_final * c_pad, n_pad).astype(jnp.bfloat16))
  bl = pad_vec(p["lin_b"], num_labels, n_pad)

  kp = dict(word_emb=p["word_emb"], seg_emb=p["seg_emb"],
            wr=wr, br=br,
            wdc=jnp.stack(wdc), bdc=jnp.stack(bdc),
            sdc=jnp.stack(sdc), tdc=jnp.stack(tdc),
            wl=wlp, bl=bl)
  meta = dict(hidden=hidden, h_pad=h_pad, num_labels=num_labels)
  return kp, meta


# ------------------------------ forward (glue) ---------------------------------

def dpcnn_forward(input_ids, segment_ids, input_mask, kp, *, meta):
  # TODO(synk): the BERT encoder (self.word_embeddings) has no small Pallas
  # equivalent; it is replaced by a deterministic token+segment embedding
  # lookup (plain-JAX glue) producing `result` of shape [B, S, hidden].
  result = kp["word_emb"][input_ids] + kp["seg_emb"][segment_ids]
  result = result * input_mask[..., None].astype(result.dtype)

  # x = result[:, 1:-2, :].permute(0, 2, 1): we stay channels-last [B, L, H];
  # the permute pair is absorbed into the kernel layout.  Stream x as bf16.
  x = result[:, 1:-2, :]
  x = jnp.pad(x, ((0, 0), (0, 0), (0, meta["h_pad"] - meta["hidden"])))
  x = x.astype(jnp.bfloat16)

  out = _dpcnn_pallas_call(x, kp)        # one fused pallas_call
  return out[:, :meta["num_labels"]]


# ------------------------------ pure-JAX reference ------------------------------

def _reference_forward(x, p):
  """f32 reference of the DPCNN conv path.  x: [B, L, hidden] channels-last."""
  def conv3(h, w, b):                       # w: [3, cin, cout]
    L = h.shape[1]
    hp = jnp.pad(h, ((0, 0), (1, 1), (0, 0)))
    win = jnp.concatenate([hp[:, 0:L], hp[:, 1:L + 1], hp[:, 2:L + 2]], axis=-1)
    return jnp.einsum("blk,kn->bln", win,
                      w.reshape(3 * w.shape[1], w.shape[2])) + b

  def bn_relu(h, s, t):
    return jnp.maximum(h * s + t, 0.0)

  def double_conv(h, dc):
    h = bn_relu(h, dc["s1"], dc["t1"])
    h = conv3(h, dc["w1"], dc["b1"])
    h = bn_relu(h, dc["s2"], dc["t2"])
    h = conv3(h, dc["w2"], dc["b2"])
    return h

  def maxpool(h):                           # ConstantPad1d((0,1)) + MaxPool1d(3,2)
    L = h.shape[1]
    hp = jnp.pad(h, ((0, 0), (0, 1), (0, 0)))
    l_out = (L - 2) // 2 + 1
    wins = jnp.stack([hp[:, 2 * j:2 * j + 3] for j in range(l_out)], axis=1)
    return wins.max(axis=2)

  r = p["region"]
  h = bn_relu(conv3(x, r["w"], r["b"]), r["s"], r["t"])
  h = double_conv(h, p["conv_block"])
  for blk in p["resnet_blocks"]:
    sc = maxpool(h)
    h = double_conv(sc, blk) + sc
  flat = h.reshape(h.shape[0], -1)          # l-major flatten, matches PyTorch
  return flat @ p["lin_w"] + p["lin_b"]


if __name__ == "__main__":
  key = jax.random.PRNGKey(0)
  B = 2
  SEQ_LEN = 16            # conv-path length (original module: 100)
  S = SEQ_LEN + 3         # BERT sequence length; result[:, 1:-2, :] drops 3
  HIDDEN = 32             # bert_output_size (original 768)
  CHANNELS = 32           # channel_size (original 250)
  NUM_LABELS = 26
  VOCAB = 64

  k_param, k_ids, k_seg, _ = jax.random.split(key, 4)
  logical = init_params(k_param, vocab=VOCAB, hidden=HIDDEN, channels=CHANNELS,
                        seq_len=SEQ_LEN, num_labels=NUM_LABELS)
  kp, meta = prepare_params(logical)

  input_ids = jax.random.randint(k_ids, (B, S), 0, VOCAB, dtype=jnp.int32)
  segment_ids = jax.random.randint(k_seg, (B, S), 0, 2, dtype=jnp.int32)
  input_mask = jnp.ones((B, S), dtype=jnp.int32)

  fwd = jax.jit(functools.partial(dpcnn_forward, meta=meta))
  out = jax.block_until_ready(fwd(input_ids, segment_ids, input_mask, kp))
  assert out.shape == (B, NUM_LABELS), out.shape
  assert bool(jnp.all(jnp.isfinite(out)))

  # tolerance-asserted pure-JAX f32 reference (kernel uses bf16 MXU operands)
  emb = kp["word_emb"][input_ids] + kp["seg_emb"][segment_ids]
  emb = emb * input_mask[..., None].astype(emb.dtype)
  ref = _reference_forward(emb[:, 1:-2, :], logical)
  err = float(jnp.max(jnp.abs(out - ref)))
  assert err < 0.05, f"kernel vs reference max-abs-err {err}"

  print("KERNEL_OK")
</pallas_src>

<mosaic_0001>
module attributes {stable_mosaic.version = 11 : i64} {
  func.func @_dpcnn_kernel(%arg0: i32, %arg1: memref<2x16x128xbf16, #tpu.memory_space<vmem>>, %arg2: memref<384x128xbf16, #tpu.memory_space<vmem>>, %arg3: memref<1x128xf32, #tpu.memory_space<vmem>>, %arg4: memref<4x2x384x128xbf16, #tpu.memory_space<vmem>>, %arg5: memref<4x2x1x128xf32, #tpu.memory_space<vmem>>, %arg6: memref<4x2x1x128xf32, #tpu.memory_space<vmem>>, %arg7: memref<4x2x1x128xf32, #tpu.memory_space<vmem>>, %arg8: memref<256x128xbf16, #tpu.memory_space<vmem>>, %arg9: memref<1x128xf32, #tpu.memory_space<vmem>>, %arg10: memref<2x128xf32, #tpu.memory_space<vmem>>, %arg11: memref<2x18x128xf32, #tpu.memory_space<vmem>>) attributes {dimension_semantics = [#tpu.dimension_semantics<parallel>], iteration_bounds = array<i64: 1>, scalar_prefetch = 0 : i64, scratch_operands = 1 : i64, tpu.core_type = #tpu.core_type<tc>, window_params = [{transform_indices = @transform_0, window_bounds = array<i64: 2, 16, 128>}, {pipeline_mode = #tpu.pipeline_mode<synchronous>, transform_indices = @transform_1, window_bounds = array<i64: 384, 128>}, {pipeline_mode = #tpu.pipeline_mode<synchronous>, transform_indices = @transform_2, window_bounds = array<i64: 1, 128>}, {pipeline_mode = #tpu.pipeline_mode<synchronous>, transform_indices = @transform_3, window_bounds = array<i64: 4, 2, 384, 128>}, {pipeline_mode = #tpu.pipeline_mode<synchronous>, transform_indices = @transform_4, window_bounds = array<i64: 4, 2, 1, 128>}, {pipeline_mode = #tpu.pipeline_mode<synchronous>, transform_indices = @transform_5, window_bounds = array<i64: 4, 2, 1, 128>}, {pipeline_mode = #tpu.pipeline_mode<synchronous>, transform_indices = @transform_6, window_bounds = array<i64: 4, 2, 1, 128>}, {pipeline_mode = #tpu.pipeline_mode<synchronous>, transform_indices = @transform_7, window_bounds = array<i64: 256, 128>}, {pipeline_mode = #tpu.pipeline_mode<synchronous>, transform_indices = @transform_8, window_bounds = array<i64: 1, 128>}, {transform_indices = @transform_9, window_bounds = array<i64: 2, 128>}]} {
    %cst = arith.constant 0.000000e+00 : f32
    %0 = vector.broadcast %cst : f32 to vector<2x1x128xf32>
    %c0 = arith.constant 0 : index
    %c0_0 = arith.constant 0 : index
    %c0_1 = arith.constant 0 : index
    %1 = vector.load %arg11[%c0, %c0_0, %c0_1] : memref<2x18x128xf32, #tpu.memory_space<vmem>>, vector<2x1x128xf32>
    tpu.vector_store %arg11[%c0, %c0_0, %c0_1], %0 {strides = array<i32>} : memref<2x18x128xf32, #tpu.memory_space<vmem>>, vector<2x1x128xf32>,
    %c0_2 = arith.constant 0 : index
    %c17 = arith.constant 17 : index
    %c0_3 = arith.constant 0 : index
    %2 = vector.load %arg11[%c0_2, %c17, %c0_3] : memref<2x18x128xf32, #tpu.memory_space<vmem>>, vector<2x1x128xf32>
    tpu.vector_store %arg11[%c0_2, %c17, %c0_3], %0 {strides = array<i32>} : memref<2x18x128xf32, #tpu.memory_space<vmem>>, vector<2x1x128xf32>,
    %c0_4 = arith.constant 0 : index
    %c0_5 = arith.constant 0 : index
    %c0_6 = arith.constant 0 : index
    %3 = vector.load %arg1[%c0_4, %c0_5, %c0_6] : memref<2x16x128xbf16, #tpu.memory_space<vmem>>, vector<2x16x128xbf16>
    %4 = arith.extf %3 : vector<2x16x128xbf16> to vector<2x16x128xf32>
    %c0_7 = arith.constant 0 : index
    %c0_8 = arith.constant 0 : index
    %5 = vector.load %arg2[%c0_7, %c0_8] : memref<384x128xbf16, #tpu.memory_space<vmem>>, vector<384x128xbf16>
    %c0_9 = arith.constant 0 : index
    %c0_10 = arith.constant 0 : index
    %6 = vector.load %arg3[%c0_9, %c0_10] : memref<1x128xf32, #tpu.memory_space<vmem>>, vector<1x128xf32>
    %c0_11 = arith.constant 0 : index
    %c1 = arith.constant 1 : index
    %c0_12 = arith.constant 0 : index
    %7 = vector.load %arg11[%c0_11, %c1, %c0_12] : memref<2x18x128xf32, #tpu.memory_space<vmem>>, vector<2x16x128xf32>
    tpu.vector_store %arg11[%c0_11, %c1, %c0_12], %4 {strides = array<i32>} : memref<2x18x128xf32, #tpu.memory_space<vmem>>, vector<2x16x128xf32>,
    %c0_13 = arith.constant 0 : index
    %c0_14 = arith.constant 0 : index
    %c0_15 = arith.constant 0 : index
    %8 = vector.load %arg11[%c0_13, %c0_14, %c0_15] : memref<2x18x128xf32, #tpu.memory_space<vmem>>, vector<2x16x128xf32>
    %9 = arith.truncf %8 : vector<2x16x128xf32> to vector<2x16x128xbf16>
    %10 = arith.truncf %4 : vector<2x16x128xf32> to vector<2x16x128xbf16>
    %c0_16 = arith.constant 0 : index
    %c2 = arith.constant 2 : index
    %c0_17 = arith.constant 0 : index
    %11 = vector.load %arg11[%c0_16, %c2, %c0_17] : memref<2x18x128xf32, #tpu.memory_space<vmem>>, vector<2x16x128xf32>
    %12 = arith.truncf %11 : vector<2x16x128xf32> to vector<2x16x128xbf16>
    %13 = tpu.concatenate %9, %10, %12 in 2 : vector<2x16x128xbf16>, vector<2x16x128xbf16>, vector<2x16x128xbf16> -> vector<2x16x384xbf16>
    %14 = vector.shape_cast %13 : vector<2x16x384xbf16> to vector<32x384xbf16>
    %cst_18 = arith.constant dense<0.000000e+00> : vector<32x128xf32>
    %15 = tpu.matmul %14, %5, %cst_18 {dimension_numbers = #tpu.dot_dimension_numbers<[1], [0], [0], [1], [0, 0, 1, 1], [], []>} : vector<32x384xbf16>, vector<384x128xbf16>, vector<32x128xf32> -> vector<32x128xf32>
    %16 = vector.broadcast %6 : vector<1x128xf32> to vector<32x128xf32>
    %17 = arith.addf %15, %16 : vector<32x128xf32>
    %18 = vector.shape_cast %17 : vector<32x128xf32> to vector<2x16x128xf32>
    %cst_19 = arith.constant 0.000000e+00 : f32
    %19 = vector.broadcast %cst_19 : f32 to vector<2x16x128xf32>
    %20 = arith.maximumf %18, %19 : vector<2x16x128xf32>
    %c0_20 = arith.constant 0 : index
    %c0_21 = arith.constant 0 : index
    %c0_22 = arith.constant 0 : index
    %c0_23 = arith.constant 0 : index
    %21 = vector.load %arg6[%c0_20, %c0_21, %c0_22, %c0_23] : memref<4x2x1x128xf32, #tpu.memory_space<vmem>>, vector<1x1x1x128xf32>
    %22 = vector.shape_cast %21 : vector<1x1x1x128xf32> to vector<1x128xf32>
    %23 = vector.shape_cast %22 : vector<1x128xf32> to vector<1x1x128xf32>
    %24 = vector.broadcast %23 : vector<1x1x128xf32> to vector<2x16x128xf32>
    %25 = arith.mulf %20, %24 : vector<2x16x128xf32>
    %c0_24 = arith.constant 0 : index
    %c0_25 = arith.constant 0 : index
    %c0_26 = arith.constant 0 : index
    %c0_27 = arith.constant 0 : index
    %26 = vector.load %arg7[%c0_24, %c0_25, %c0_26, %c0_27] : memref<4x2x1x128xf32, #tpu.memory_space<vmem>>, vector<1x1x1x128xf32>
    %27 = vector.shape_cast %26 : vector<1x1x1x128xf32> to vector<1x128xf32>
    %28 = vector.shape_cast %27 : vector<1x128xf32> to vector<1x1x128xf32>
    %29 = vector.broadcast %28 : vector<1x1x128xf32> to vector<2x16x128xf32>
    %30 = arith.addf %25, %29 : vector<2x16x128xf32>
    %cst_28 = arith.constant 0.000000e+00 : f32
    %31 = vector.broadcast %cst_28 : f32 to vector<2x16x128xf32>
    %32 = arith.maximumf %30, %31 : vector<2x16x128xf32>
    %c0_29 = arith.constant 0 : index
    %c0_30 = arith.constant 0 : index
    %c0_31 = arith.constant 0 : index
    %c0_32 = arith.constant 0 : index
    %33 = vector.load %arg4[%c0_29, %c0_30, %c0_31, %c0_32] : memref<4x2x384x128xbf16, #tpu.memory_space<vmem>>, vector<1x1x384x128xbf16>
    %34 = vector.shape_cast %33 : vector<1x1x384x128xbf16> to vector<384x128xbf16>
    %c0_33 = arith.constant 0 : index
    %c0_34 = arith.constant 0 : index
    %c0_35 = arith.constant 0 : index
    %c0_36 = arith.constant 0 : index
    %35 = vector.load %arg5[%c0_33, %c0_34, %c0_35, %c0_36] : memref<4x2x1x128xf32, #tpu.memory_space<vmem>>, vector<1x1x1x128xf32>
    %36 = vector.shape_cast %35 : vector<1x1x1x128xf32> to vector<1x128xf32>
    %c0_37 = arith.constant 0 : index
    %c1_38 = arith.constant 1 : index
    %c0_39 = arith.constant 0 : index
    %37 = vector.load %arg11[%c0_37, %c1_38, %c0_39] : memref<2x18x128xf32, #tpu.memory_space<vmem>>, vector<2x16x128xf32>
    tpu.vector_store %arg11[%c0_37, %c1_38, %c0_39], %32 {strides = array<i32>} : memref<2x18x128xf32, #tpu.memory_space<vmem>>, vector<2x16x128xf32>,
    %c0_40 = arith.constant 0 : index
    %c0_41 = arith.constant 0 : index
    %c0_42 = arith.constant 0 : index
    %38 = vector.load %arg11[%c0_40, %c0_41, %c0_42] : memref<2x18x128xf32, #tpu.memory_space<vmem>>, vector<2x16x128xf32>
    %39 = arith.truncf %38 : vector<2x16x128xf32> to vector<2x16x128xbf16>
    %40 = arith.truncf %32 : vector<2x16x128xf32> to vector<2x16x128xbf16>
    %c0_43 = arith.constant 0 : index
    %c2_44 = arith.constant 2 : index
    %c0_45 = arith.constant 0 : index
    %41 = vector.load %arg11[%c0_43, %c2_44, %c0_45] : memref<2x18x128xf32, #tpu.memory_space<vmem>>, vector<2x16x128xf32>
    %42 = arith.truncf %41 : vector<2x16x128xf32> to vector<2x16x128xbf16>
    %43 = tpu.concatenate %39, %40, %42 in 2 : vector<2x16x128xbf16>, vector<2x16x128xbf16>, vector<2x16x128xbf16> -> vector<2x16x384xbf16>
    %44 = vector.shape_cast %43 : vector<2x16x384xbf16> to vector<32x384xbf16>
    %cst_46 = arith.constant dense<0.000000e+00> : vector<32x128xf32>
    %45 = tpu.matmul %44, %34, %cst_46 {dimension_numbers = #tpu.dot_dimension_numbers<[1], [0], [0], [1], [0, 0, 1, 1], [], []>} : vector<32x384xbf16>, vector<384x128xbf16>, vector<32x128xf32> -> vector<32x128xf32>
    %46 = vector.broadcast %36 : vector<1x128xf32> to vector<32x128xf32>
    %47 = arith.addf %45, %46 : vector<32x128xf32>
    %48 = vector.shape_cast %47 : vector<32x128xf32> to vector<2x16x128xf32>
    %c0_47 = arith.constant 0 : index
    %c1_48 = arith.constant 1 : index
    %c0_49 = arith.constant 0 : index
    %c0_50 = arith.constant 0 : index
    %49 = vector.load %arg6[%c0_47, %c1_48, %c0_49, %c0_50] : memref<4x2x1x128xf32, #tpu.memory_space<vmem>>, vector<1x1x1x128xf32>
    %50 = vector.shape_cast %49 : vector<1x1x1x128xf32> to vector<1x128xf32>
    %51 = vector.shape_cast %50 : vector<1x128xf32> to vector<1x1x128xf32>
    %52 = vector.broadcast %51 : vector<1x1x128xf32> to vector<2x16x128xf32>
    %53 = arith.mulf %48, %52 : vector<2x16x128xf32>
    %c0_51 = arith.constant 0 : index
    %c1_52 = arith.constant 1 : index
    %c0_53 = arith.constant 0 : index
    %c0_54 = arith.constant 0 : index
    %54 = vector.load %arg7[%c0_51, %c1_52, %c0_53, %c0_54] : memref<4x2x1x128xf32, #tpu.memory_space<vmem>>, vector<1x1x1x128xf32>
    %55 = vector.shape_cast %54 : vector<1x1x1x128xf32> to vector<1x128xf32>
    %56 = vector.shape_cast %55 : vector<1x128xf32> to vector<1x1x128xf32>
    %57 = vector.broadcast %56 : vector<1x1x128xf32> to vector<2x16x128xf32>
    %58 = arith.addf %53, %57 : vector<2x16x128xf32>
    %cst_55 = arith.constant 0.000000e+00 : f32
    %59 = vector.broadcast %cst_55 : f32 to vector<2x16x128xf32>
    %60 = arith.maximumf %58, %59 : vector<2x16x128xf32>
    %c0_56 = arith.constant 0 : index
    %c1_57 = arith.constant 1 : index
    %c0_58 = arith.constant 0 : index
    %c0_59 = arith.constant 0 : index
    %61 = vector.load %arg4[%c0_56, %c1_57, %c0_58, %c0_59] : memref<4x2x384x128xbf16, #tpu.memory_space<vmem>>, vector<1x1x384x128xbf16>
    %62 = vector.shape_cast %61 : vector<1x1x384x128xbf16> to vector<384x128xbf16>
    %c0_60 = arith.constant 0 : index
    %c1_61 = arith.constant 1 : index
    %c0_62 = arith.constant 0 : index
    %c0_63 = arith.constant 0 : index
    %63 = vector.load %arg5[%c0_60, %c1_61, %c0_62, %c0_63] : memref<4x2x1x128xf32, #tpu.memory_space<vmem>>, vector<1x1x1x128xf32>
    %64 = vector.shape_cast %63 : vector<1x1x1x128xf32> to vector<1x128xf32>
    %c0_64 = arith.constant 0 : index
    %c1_65 = arith.constant 1 : index
    %c0_66 = arith.constant 0 : index
    %65 = vector.load %arg11[%c0_64, %c1_65, %c0_66] : memref<2x18x128xf32, #tpu.memory_space<vmem>>, vector<2x16x128xf32>
    tpu.vector_store %arg11[%c0_64, %c1_65, %c0_66], %60 {strides = array<i32>} : memref<2x18x128xf32, #tpu.memory_space<vmem>>, vector<2x16x128xf32>,
    %c0_67 = arith.constant 0 : index
    %c0_68 = arith.constant 0 : index
    %c0_69 = arith.constant 0 : index
    %66 = vector.load %arg11[%c0_67, %c0_68, %c0_69] : memref<2x18x128xf32, #tpu.memory_space<vmem>>, vector<2x16x128xf32>
    %67 = arith.truncf %66 : vector<2x16x128xf32> to vector<2x16x128xbf16>
    %68 = arith.truncf %60 : vector<2x16x128xf32> to vector<2x16x128xbf16>
    %c0_70 = arith.constant 0 : index
    %c2_71 = arith.constant 2 : index
    %c0_72 = arith.constant 0 : index
    %69 = vector.load %arg11[%c0_70, %c2_71, %c0_72] : memref<2x18x128xf32, #tpu.memory_space<vmem>>, vector<2x16x128xf32>
    %70 = arith.truncf %69 : vector<2x16x128xf32> to vector<2x16x128xbf16>
    %71 = tpu.concatenate %67, %68, %70 in 2 : vector<2x16x128xbf16>, vector<2x16x128xbf16>, vector<2x16x128xbf16> -> vector<2x16x384xbf16>
    %72 = vector.shape_cast %71 : vector<2x16x384xbf16> to vector<32x384xbf16>
    %cst_73 = arith.constant dense<0.000000e+00> : vector<32x128xf32>
    %73 = tpu.matmul %72, %62, %cst_73 {dimension_numbers = #tpu.dot_dimension_numbers<[1], [0], [0], [1], [0, 0, 1, 1], [], []>} : vector<32x384xbf16>, vector<384x128xbf16>, vector<32x128xf32> -> vector<32x128xf32>
    %74 = vector.broadcast %64 : vector<1x128xf32> to vector<32x128xf32>
    %75 = arith.addf %73, %74 : vector<32x128xf32>
    %76 = vector.shape_cast %75 : vector<32x128xf32> to vector<2x16x128xf32>
    %c0_74 = arith.constant 0 : index
    %c1_75 = arith.constant 1 : index
    %c0_76 = arith.constant 0 : index
    %77 = vector.load %arg11[%c0_74, %c1_75, %c0_76] : memref<2x18x128xf32, #tpu.memory_space<vmem>>, vector<2x16x128xf32>
    tpu.vector_store %arg11[%c0_74, %c1_75, %c0_76], %76 {strides = array<i32>} : memref<2x18x128xf32, #tpu.memory_space<vmem>>, vector<2x16x128xf32>,
    %c0_77 = arith.constant 0 : index
    %c1_78 = arith.constant 1 : index
    %c0_79 = arith.constant 0 : index
    %78 = tpu.strided_load %arg11[%c0_77, %c1_78, %c0_79] {strides = array<i32: 1, 2, 1>} : memref<2x18x128xf32, #tpu.memory_space<vmem>>, vector<2x8x128xf32>
    %c0_80 = arith.constant 0 : index
    %c2_81 = arith.constant 2 : index
    %c0_82 = arith.constant 0 : index
    %79 = tpu.strided_load %arg11[%c0_80, %c2_81, %c0_82] {strides = array<i32: 1, 2, 1>} : memref<2x18x128xf32, #tpu.memory_space<vmem>>, vector<2x8x128xf32>
    %c0_83 = arith.constant 0 : index
    %c3 = arith.constant 3 : index
    %c0_84 = arith.constant 0 : index
    %80 = tpu.strided_load %arg11[%c0_83, %c3, %c0_84] {strides = array<i32: 1, 2, 1>} : memref<2x18x128xf32, #tpu.memory_space<vmem>>, vector<2x8x128xf32>
    %81 = arith.maximumf %78, %79 : vector<2x8x128xf32>
    %82 = arith.maximumf %81, %80 : vector<2x8x128xf32>
    %c0_85 = arith.constant 0 : index
    %c9 = arith.constant 9 : index
    %c0_86 = arith.constant 0 : index
    %83 = vector.load %arg11[%c0_85, %c9, %c0_86] : memref<2x18x128xf32, #tpu.memory_space<vmem>>, vector<2x1x128xf32>
    tpu.vector_store %arg11[%c0_85, %c9, %c0_86], %0 {strides = array<i32>} : memref<2x18x128xf32, #tpu.memory_space<vmem>>, vector<2x1x128xf32>,
    %c1_87 = arith.constant 1 : index
    %c0_88 = arith.constant 0 : index
    %c0_89 = arith.constant 0 : index
    %c0_90 = arith.constant 0 : index
    %84 = vector.load %arg6[%c1_87, %c0_88, %c0_89, %c0_90] : memref<4x2x1x128xf32, #tpu.memory_space<vmem>>, vector<1x1x1x128xf32>
    %85 = vector.shape_cast %84 : vector<1x1x1x128xf32> to vector<1x128xf32>
    %86 = vector.shape_cast %85 : vector<1x128xf32> to vector<1x1x128xf32>
    %87 = vector.broadcast %86 : vector<1x1x128xf32> to vector<2x8x128xf32>
    %88 = arith.mulf %82, %87 : vector<2x8x128xf32>
    %c1_91 = arith.constant 1 : index
    %c0_92 = arith.constant 0 : index
    %c0_93 = arith.constant 0 : index
    %c0_94 = arith.constant 0 : index
    %89 = vector.load %arg7[%c1_91, %c0_92, %c0_93, %c0_94] : memref<4x2x1x128xf32, #tpu.memory_space<vmem>>, vector<1x1x1x128xf32>
    %90 = vector.shape_cast %89 : vector<1x1x1x128xf32> to vector<1x128xf32>
    %91 = vector.shape_cast %90 : vector<1x128xf32> to vector<1x1x128xf32>
    %92 = vector.broadcast %91 : vector<1x1x128xf32> to vector<2x8x128xf32>
    %93 = arith.addf %88, %92 : vector<2x8x128xf32>
    %cst_95 = arith.constant 0.000000e+00 : f32
    %94 = vector.broadcast %cst_95 : f32 to vector<2x8x128xf32>
    %95 = arith.maximumf %93, %94 : vector<2x8x128xf32>
    %c1_96 = arith.constant 1 : index
    %c0_97 = arith.constant 0 : index
    %c0_98 = arith.constant 0 : index
    %c0_99 = arith.constant 0 : index
    %96 = vector.load %arg4[%c1_96, %c0_97, %c0_98, %c0_99] : memref<4x2x384x128xbf16, #tpu.memory_space<vmem>>, vector<1x1x384x128xbf16>
    %97 = vector.shape_cast %96 : vector<1x1x384x128xbf16> to vector<384x128xbf16>
    %c1_100 = arith.constant 1 : index
    %c0_101 = arith.constant 0 : index
    %c0_102 = arith.constant 0 : index
    %c0_103 = arith.constant 0 : index
    %98 = vector.load %arg5[%c1_100, %c0_101, %c0_102, %c0_103] : memref<4x2x1x128xf32, #tpu.memory_space<vmem>>, vector<1x1x1x128xf32>
    %99 = vector.shape_cast %98 : vector<1x1x1x128xf32> to vector<1x128xf32>
    %c0_104 = arith.constant 0 : index
    %c1_105 = arith.constant 1 : index
    %c0_106 = arith.constant 0 : index
    %100 = vector.load %arg11[%c0_104, %c1_105, %c0_106] : memref<2x18x128xf32, #tpu.memory_space<vmem>>, vector<2x8x128xf32>
    tpu.vector_store %arg11[%c0_104, %c1_105, %c0_106], %95 {strides = array<i32>} : memref<2x18x128xf32, #tpu.memory_space<vmem>>, vector<2x8x128xf32>,
    %c0_107 = arith.constant 0 : index
    %c0_108 = arith.constant 0 : index
    %c0_109 = arith.constant 0 : index
    %101 = vector.load %arg11[%c0_107, %c0_108, %c0_109] : memref<2x18x128xf32, #tpu.memory_space<vmem>>, vector<2x8x128xf32>
    %102 = arith.truncf %101 : vector<2x8x128xf32> to vector<2x8x128xbf16>
    %103 = arith.truncf %95 : vector<2x8x128xf32> to vector<2x8x128xbf16>
    %c0_110 = arith.constant 0 : index
    %c2_111 = arith.constant 2 : index
    %c0_112 = arith.constant 0 : index
    %104 = vector.load %arg11[%c0_110, %c2_111, %c0_112] : memref<2x18x128xf32, #tpu.memory_space<vmem>>, vector<2x8x128xf32>
    %105 = arith.truncf %104 : vector<2x8x128xf32> to vector<2x8x128xbf16>
    %106 = tpu.concatenate %102, %103, %105 in 2 : vector<2x8x128xbf16>, vector<2x8x128xbf16>, vector<2x8x128xbf16> -> vector<2x8x384xbf16>
    %107 = vector.shape_cast %106 : vector<2x8x384xbf16> to vector<16x384xbf16>
    %cst_113 = arith.constant dense<0.000000e+00> : vector<16x128xf32>
    %108 = tpu.matmul %107, %97, %cst_113 {dimension_numbers = #tpu.dot_dimension_numbers<[1], [0], [0], [1], [0, 0, 1, 1], [], []>} : vector<16x384xbf16>, vector<384x128xbf16>, vector<16x128xf32> -> vector<16x128xf32>
    %109 = vector.broadcast %99 : vector<1x128xf32> to vector<16x128xf32>
    %110 = arith.addf %108, %109 : vector<16x128xf32>
    %111 = vector.shape_cast %110 : vector<16x128xf32> to vector<2x8x128xf32>
    %c1_114 = arith.constant 1 : index
    %c1_115 = arith.constant 1 : index
    %c0_116 = arith.constant 0 : index
    %c0_117 = arith.constant 0 : index
    %112 = vector.load %arg6[%c1_114, %c1_115, %c0_116, %c0_117] : memref<4x2x1x128xf32, #tpu.memory_space<vmem>>, vector<1x1x1x128xf32>
    %113 = vector.shape_cast %112 : vector<1x1x1x128xf32> to vector<1x128xf32>
    %114 = vector.shape_cast %113 : vector<1x128xf32> to vector<1x1x128xf32>
    %115 = vector.broadcast %114 : vector<1x1x128xf32> to vector<2x8x128xf32>
    %116 = arith.mulf %111, %115 : vector<2x8x128xf32>
    %c1_118 = arith.constant 1 : index
    %c1_119 = arith.constant 1 : index
    %c0_120 = arith.constant 0 : index
    %c0_121 = arith.constant 0 : index
    %117 = vector.load %arg7[%c1_118, %c1_119, %c0_120, %c0_121] : memref<4x2x1x128xf32, #tpu.memory_space<vmem>>, vector<1x1x1x128xf32>
    %118 = vector.shape_cast %117 : vector<1x1x1x128xf32> to vector<1x128xf32>
    %119 = vector.shape_cast %118 : vector<1x128xf32> to vector<1x1x128xf32>
    %120 = vector.broadcast %119 : vector<1x1x128xf32> to vector<2x8x128xf32>
    %121 = arith.addf %116, %120 : vector<2x8x128xf32>
    %cst_122 = arith.constant 0.000000e+00 : f32
    %122 = vector.broadcast %cst_122 : f32 to vector<2x8x128xf32>
    %123 = arith.maximumf %121, %122 : vector<2x8x128xf32>
    %c1_123 = arith.constant 1 : index
    %c1_124 = arith.constant 1 : index
    %c0_125 = arith.constant 0 : index
    %c0_126 = arith.constant 0 : index
    %124 = vector.load %arg4[%c1_123, %c1_124, %c0_125, %c0_126] : memref<4x2x384x128xbf16, #tpu.memory_space<vmem>>, vector<1x1x384x128xbf16>
    %125 = vector.shape_cast %124 : vector<1x1x384x128xbf16> to vector<384x128xbf16>
    %c1_127 = arith.constant 1 : index
    %c1_128 = arith.constant 1 : index
    %c0_129 = arith.constant 0 : index
    %c0_130 = arith.constant 0 : index
    %126 = vector.load %arg5[%c1_127, %c1_128, %c0_129, %c0_130] : memref<4x2x1x128xf32, #tpu.memory_space<vmem>>, vector<1x1x1x128xf32>
    %127 = vector.shape_cast %126 : vector<1x1x1x128xf32> to vector<1x128xf32>
    %c0_131 = arith.constant 0 : index
    %c1_132 = arith.constant 1 : index
    %c0_133 = arith.constant 0 : index
    %128 = vector.load %arg11[%c0_131, %c1_132, %c0_133] : memref<2x18x128xf32, #tpu.memory_space<vmem>>, vector<2x8x128xf32>
    tpu.vector_store %arg11[%c0_131, %c1_132, %c0_133], %123 {strides = array<i32>} : memref<2x18x128xf32, #tpu.memory_space<vmem>>, vector<2x8x128xf32>,
    %c0_134 = arith.constant 0 : index
    %c0_135 = arith.constant 0 : index
    %c0_136 = arith.constant 0 : index
    %129 = vector.load %arg11[%c0_134, %c0_135, %c0_136] : memref<2x18x128xf32, #tpu.memory_space<vmem>>, vector<2x8x128xf32>
    %130 = arith.truncf %129 : vector<2x8x128xf32> to vector<2x8x128xbf16>
    %131 = arith.truncf %123 : vector<2x8x128xf32> to vector<2x8x128xbf16>
    %c0_137 = arith.constant 0 : index
    %c2_138 = arith.constant 2 : index
    %c0_139 = arith.constant 0 : index
    %132 = vector.load %arg11[%c0_137, %c2_138, %c0_139] : memref<2x18x128xf32, #tpu.memory_space<vmem>>, vector<2x8x128xf32>
    %133 = arith.truncf %132 : vector<2x8x128xf32> to vector<2x8x128xbf16>
    %134 = tpu.concatenate %130, %131, %133 in 2 : vector<2x8x128xbf16>, vector<2x8x128xbf16>, vector<2x8x128xbf16> -> vector<2x8x384xbf16>
    %135 = vector.shape_cast %134 : vector<2x8x384xbf16> to vector<16x384xbf16>
    %cst_140 = arith.constant dense<0.000000e+00> : vector<16x128xf32>
    %136 = tpu.matmul %135, %125, %cst_140 {dimension_numbers = #tpu.dot_dimension_numbers<[1], [0], [0], [1], [0, 0, 1, 1], [], []>} : vector<16x384xbf16>, vector<384x128xbf16>, vector<16x128xf32> -> vector<16x128xf32>
    %137 = vector.broadcast %127 : vector<1x128xf32> to vector<16x128xf32>
    %138 = arith.addf %136, %137 : vector<16x128xf32>
    %139 = vector.shape_cast %138 : vector<16x128xf32> to vector<2x8x128xf32>
    %140 = arith.addf %139, %82 : vector<2x8x128xf32>
    %c0_141 = arith.constant 0 : index
    %c1_142 = arith.constant 1 : index
    %c0_143 = arith.constant 0 : index
    %141 = vector.load %arg11[%c0_141, %c1_142, %c0_143] : memref<2x18x128xf32, #tpu.memory_space<vmem>>, vector<2x8x128xf32>
    tpu.vector_store %arg11[%c0_141, %c1_142, %c0_143], %140 {strides = array<i32>} : memref<2x18x128xf32, #tpu.memory_space<vmem>>, vector<2x8x128xf32>,
    %c0_144 = arith.constant 0 : index
    %c1_145 = arith.constant 1 : index
    %c0_146 = arith.constant 0 : index
    %142 = tpu.strided_load %arg11[%c0_144, %c1_145, %c0_146] {strides = array<i32: 1, 2, 1>} : memref<2x18x128xf32, #tpu.memory_space<vmem>>, vector<2x4x128xf32>
    %c0_147 = arith.constant 0 : index
    %c2_148 = arith.constant 2 : index
    %c0_149 = arith.constant 0 : index
    %143 = tpu.strided_load %arg11[%c0_147, %c2_148, %c0_149] {strides = array<i32: 1, 2, 1>} : memref<2x18x128xf32, #tpu.memory_space<vmem>>, vector<2x4x128xf32>
    %c0_150 = arith.constant 0 : index
    %c3_151 = arith.constant 3 : index
    %c0_152 = arith.constant 0 : index
    %144 = tpu.strided_load %arg11[%c0_150, %c3_151, %c0_152] {strides = array<i32: 1, 2, 1>} : memref<2x18x128xf32, #tpu.memory_space<vmem>>, vector<2x4x128xf32>
    %145 = arith.maximumf %142, %143 : vector<2x4x128xf32>
    %146 = arith.maximumf %145, %144 : vector<2x4x128xf32>
    %c0_153 = arith.constant 0 : index
    %c5 = arith.constant 5 : index
    %c0_154 = arith.constant 0 : index
    %147 = vector.load %arg11[%c0_153, %c5, %c0_154] : memref<2x18x128xf32, #tpu.memory_space<vmem>>, vector<2x1x128xf32>
    tpu.vector_store %arg11[%c0_153, %c5, %c0_154], %0 {strides = array<i32>} : memref<2x18x128xf32, #tpu.memory_space<vmem>>, vector<2x1x128xf32>,
    %c2_155 = arith.constant 2 : index
    %c0_156 = arith.constant 0 : index
    %c0_157 = arith.constant 0 : index
    %c0_158 = arith.constant 0 : index
    %148 = vector.load %arg6[%c2_155, %c0_156, %c0_157, %c0_158] : memref<4x2x1x128xf32, #tpu.memory_space<vmem>>, vector<1x1x1x128xf32>
    %149 = vector.shape_cast %148 : vector<1x1x1x128xf32> to vector<1x128xf32>
    %150 = vector.shape_cast %149 : vector<1x128xf32> to vector<1x1x128xf32>
    %151 = vector.broadcast %150 : vector<1x1x128xf32> to vector<2x4x128xf32>
    %152 = arith.mulf %146, %151 : vector<2x4x128xf32>
    %c2_159 = arith.constant 2 : index
    %c0_160 = arith.constant 0 : index
    %c0_161 = arith.constant 0 : index
    %c0_162 = arith.constant 0 : index
    %153 = vector.load %arg7[%c2_159, %c0_160, %c0_161, %c0_162] : memref<4x2x1x128xf32, #tpu.memory_space<vmem>>, vector<1x1x1x128xf32>
    %154 = vector.shape_cast %153 : vector<1x1x1x128xf32> to vector<1x128xf32>
    %155 = vector.shape_cast %154 : vector<1x128xf32> to vector<1x1x128xf32>
    %156 = vector.broadcast %155 : vector<1x1x128xf32> to vector<2x4x128xf32>
    %157 = arith.addf %152, %156 : vector<2x4x128xf32>
    %cst_163 = arith.constant 0.000000e+00 : f32
    %158 = vector.broadcast %cst_163 : f32 to vector<2x4x128xf32>
    %159 = arith.maximumf %157, %158 : vector<2x4x128xf32>
    %c2_164 = arith.constant 2 : index
    %c0_165 = arith.constant 0 : index
    %c0_166 = arith.constant 0 : index
    %c0_167 = arith.constant 0 : index
    %160 = vector.load %arg4[%c2_164, %c0_165, %c0_166, %c0_167] : memref<4x2x384x128xbf16, #tpu.memory_space<vmem>>, vector<1x1x384x128xbf16>
    %161 = vector.shape_cast %160 : vector<1x1x384x128xbf16> to vector<384x128xbf16>
    %c2_168 = arith.constant 2 : index
    %c0_169 = arith.constant 0 : index
    %c0_170 = arith.constant 0 : index
    %c0_171 = arith.constant 0 : index
    %162 = vector.load %arg5[%c2_168, %c0_169, %c0_170, %c0_171] : memref<4x2x1x128xf32, #tpu.memory_space<vmem>>, vector<1x1x1x128xf32>
    %163 = vector.shape_cast %162 : vector<1x1x1x128xf32> to vector<1x128xf32>
    %c0_172 = arith.constant 0 : index
    %c1_173 = arith.constant 1 : index
    %c0_174 = arith.constant 0 : index
    %164 = vector.load %arg11[%c0_172, %c1_173, %c0_174] : memref<2x18x128xf32, #tpu.memory_space<vmem>>, vector<2x4x128xf32>
    tpu.vector_store %arg11[%c0_172, %c1_173, %c0_174], %159 {strides = array<i32>} : memref<2x18x128xf32, #tpu.memory_space<vmem>>, vector<2x4x128xf32>,
    %c0_175 = arith.constant 0 : index
    %c0_176 = arith.constant 0 : index
    %c0_177 = arith.constant 0 : index
    %165 = vector.load %arg11[%c0_175, %c0_176, %c0_177] : memref<2x18x128xf32, #tpu.memory_space<vmem>>, vector<2x4x128xf32>
    %166 = arith.truncf %165 : vector<2x4x128xf32> to vector<2x4x128xbf16>
    %167 = arith.truncf %159 : vector<2x4x128xf32> to vector<2x4x128xbf16>
    %c0_178 = arith.constant 0 : index
    %c2_179 = arith.constant 2 : index
    %c0_180 = arith.constant 0 : index
    %168 = vector.load %arg11[%c0_178, %c2_179, %c0_180] : memref<2x18x128xf32, #tpu.memory_space<vmem>>, vector<2x4x128xf32>
    %169 = arith.truncf %168 : vector<2x4x128xf32> to vector<2x4x128xbf16>
    %170 = tpu.concatenate %166, %167, %169 in 2 : vector<2x4x128xbf16>, vector<2x4x128xbf16>, vector<2x4x128xbf16> -> vector<2x4x384xbf16>
    %171 = vector.shape_cast %170 : vector<2x4x384xbf16> to vector<8x384xbf16>
    %cst_181 = arith.constant dense<0.000000e+00> : vector<8x128xf32>
    %172 = tpu.matmul %171, %161, %cst_181 {dimension_numbers = #tpu.dot_dimension_numbers<[1], [0], [0], [1], [0, 0, 1, 1], [], []>} : vector<8x384xbf16>, vector<384x128xbf16>, vector<8x128xf32> -> vector<8x128xf32>
    %173 = vector.broadcast %163 : vector<1x128xf32> to vector<8x128xf32>
    %174 = arith.addf %172, %173 : vector<8x128xf32>
    %175 = vector.shape_cast %174 : vector<8x128xf32> to vector<2x4x128xf32>
    %c2_182 = arith.constant 2 : index
    %c1_183 = arith.constant 1 : index
    %c0_184 = arith.constant 0 : index
    %c0_185 = arith.constant 0 : index
    %176 = vector.load %arg6[%c2_182, %c1_183, %c0_184, %c0_185] : memref<4x2x1x128xf32, #tpu.memory_space<vmem>>, vector<1x1x1x128xf32>
    %177 = vector.shape_cast %176 : vector<1x1x1x128xf32> to vector<1x128xf32>
    %178 = vector.shape_cast %177 : vector<1x128xf32> to vector<1x1x128xf32>
    %179 = vector.broadcast %178 : vector<1x1x128xf32> to vector<2x4x128xf32>
    %180 = arith.mulf %175, %179 : vector<2x4x128xf32>
    %c2_186 = arith.constant 2 : index
    %c1_187 = arith.constant 1 : index
    %c0_188 = arith.constant 0 : index
    %c0_189 = arith.constant 0 : index
    %181 = vector.load %arg7[%c2_186, %c1_187, %c0_188, %c0_189] : memref<4x2x1x128xf32, #tpu.memory_space<vmem>>, vector<1x1x1x128xf32>
    %182 = vector.shape_cast %181 : vector<1x1x1x128xf32> to vector<1x128xf32>
    %183 = vector.shape_cast %182 : vector<1x128xf32> to vector<1x1x128xf32>
    %184 = vector.broadcast %183 : vector<1x1x128xf32> to vector<2x4x128xf32>
    %185 = arith.addf %180, %184 : vector<2x4x128xf32>
    %cst_190 = arith.constant 0.000000e+00 : f32
    %186 = vector.broadcast %cst_190 : f32 to vector<2x4x128xf32>
    %187 = arith.maximumf %185, %186 : vector<2x4x128xf32>
    %c2_191 = arith.constant 2 : index
    %c1_192 = arith.constant 1 : index
    %c0_193 = arith.constant 0 : index
    %c0_194 = arith.constant 0 : index
    %188 = vector.load %arg4[%c2_191, %c1_192, %c0_193, %c0_194] : memref<4x2x384x128xbf16, #tpu.memory_space<vmem>>, vector<1x1x384x128xbf16>
    %189 = vector.shape_cast %188 : vector<1x1x384x128xbf16> to vector<384x128xbf16>
    %c2_195 = arith.constant 2 : index
    %c1_196 = arith.constant 1 : index
    %c0_197 = arith.constant 0 : index
    %c0_198 = arith.constant 0 : index
    %190 = vector.load %arg5[%c2_195, %c1_196, %c0_197, %c0_198] : memref<4x2x1x128xf32, #tpu.memory_space<vmem>>, vector<1x1x1x128xf32>
    %191 = vector.shape_cast %190 : vector<1x1x1x128xf32> to vector<1x128xf32>
    %c0_199 = arith.constant 0 : index
    %c1_200 = arith.constant 1 : index
    %c0_201 = arith.constant 0 : index
    %192 = vector.load %arg11[%c0_199, %c1_200, %c0_201] : memref<2x18x128xf32, #tpu.memory_space<vmem>>, vector<2x4x128xf32>
    tpu.vector_store %arg11[%c0_199, %c1_200, %c0_201], %187 {strides = array<i32>} : memref<2x18x128xf32, #tpu.memory_space<vmem>>, vector<2x4x128xf32>,
    %c0_202 = arith.constant 0 : index
    %c0_203 = arith.constant 0 : index
    %c0_204 = arith.constant 0 : index
    %193 = vector.load %arg11[%c0_202, %c0_203, %c0_204] : memref<2x18x128xf32, #tpu.memory_space<vmem>>, vector<2x4x128xf32>
    %194 = arith.truncf %193 : vector<2x4x128xf32> to vector<2x4x128xbf16>
    %195 = arith.truncf %187 : vector<2x4x128xf32> to vector<2x4x128xbf16>
    %c0_205 = arith.constant 0 : index
    %c2_206 = arith.constant 2 : index
    %c0_207 = arith.constant 0 : index
    %196 = vector.load %arg11[%c0_205, %c2_206, %c0_207] : memref<2x18x128xf32, #tpu.memory_space<vmem>>, vector<2x4x128xf32>
    %197 = arith.truncf %196 : vector<2x4x128xf32> to vector<2x4x128xbf16>
    %198 = tpu.concatenate %194, %195, %197 in 2 : vector<2x4x128xbf16>, vector<2x4x128xbf16>, vector<2x4x128xbf16> -> vector<2x4x384xbf16>
    %199 = vector.shape_cast %198 : vector<2x4x384xbf16> to vector<8x384xbf16>
    %cst_208 = arith.constant dense<0.000000e+00> : vector<8x128xf32>
    %200 = tpu.matmul %199, %189, %cst_208 {dimension_numbers = #tpu.dot_dimension_numbers<[1], [0], [0], [1], [0, 0, 1, 1], [], []>} : vector<8x384xbf16>, vector<384x128xbf16>, vector<8x128xf32> -> vector<8x128xf32>
    %201 = vector.broadcast %191 : vector<1x128xf32> to vector<8x128xf32>
    %202 = arith.addf %200, %201 : vector<8x128xf32>
    %203 = vector.shape_cast %202 : vector<8x128xf32> to vector<2x4x128xf32>
    %204 = arith.addf %203, %146 : vector<2x4x128xf32>
    %c0_209 = arith.constant 0 : index
    %c1_210 = arith.constant 1 : index
    %c0_211 = arith.constant 0 : index
    %205 = vector.load %arg11[%c0_209, %c1_210, %c0_211] : memref<2x18x128xf32, #tpu.memory_space<vmem>>, vector<2x4x128xf32>
    tpu.vector_store %arg11[%c0_209, %c1_210, %c0_211], %204 {strides = array<i32>} : memref<2x18x128xf32, #tpu.memory_space<vmem>>, vector<2x4x128xf32>,
    %c0_212 = arith.constant 0 : index
    %c1_213 = arith.constant 1 : index
    %c0_214 = arith.constant 0 : index
    %206 = tpu.strided_load %arg11[%c0_212, %c1_213, %c0_214] {strides = array<i32: 1, 2, 1>} : memref<2x18x128xf32, #tpu.memory_space<vmem>>, vector<2x2x128xf32>
    %c0_215 = arith.constant 0 : index
    %c2_216 = arith.constant 2 : index
    %c0_217 = arith.constant 0 : index
    %207 = tpu.strided_load %arg11[%c0_215, %c2_216, %c0_217] {strides = array<i32: 1, 2, 1>} : memref<2x18x128xf32, #tpu.memory_space<vmem>>, vector<2x2x128xf32>
    %c0_218 = arith.constant 0 : index
    %c3_219 = arith.constant 3 : index
    %c0_220 = arith.constant 0 : index
    %208 = tpu.strided_load %arg11[%c0_218, %c3_219, %c0_220] {strides = array<i32: 1, 2, 1>} : memref<2x18x128xf32, #tpu.memory_space<vmem>>, vector<2x2x128xf32>
    %209 = arith.maximumf %206, %207 : vector<2x2x128xf32>
    %210 = arith.maximumf %209, %208 : vector<2x2x128xf32>
    %c0_221 = arith.constant 0 : index
    %c3_222 = arith.constant 3 : index
    %c0_223 = arith.constant 0 : index
    %211 = vector.load %arg11[%c0_221, %c3_222, %c0_223] : memref<2x18x128xf32, #tpu.memory_space<vmem>>, vector<2x1x128xf32>
    tpu.vector_store %arg11[%c0_221, %c3_222, %c0_223], %0 {strides = array<i32>} : memref<2x18x128xf32, #tpu.memory_space<vmem>>, vector<2x1x128xf32>,
    %c3_224 = arith.constant 3 : index
    %c0_225 = arith.constant 0 : index
    %c0_226 = arith.constant 0 : index
    %c0_227 = arith.constant 0 : index
    %212 = vector.load %arg6[%c3_224, %c0_225, %c0_226, %c0_227] : memref<4x2x1x128xf32, #tpu.memory_space<vmem>>, vector<1x1x1x128xf32>
    %213 = vector.shape_cast %212 : vector<1x1x1x128xf32> to vector<1x128xf32>
    %214 = vector.shape_cast %213 : vector<1x128xf32> to vector<1x1x128xf32>
    %215 = vector.broadcast %214 : vector<1x1x128xf32> to vector<2x2x128xf32>
    %216 = arith.mulf %210, %215 : vector<2x2x128xf32>
    %c3_228 = arith.constant 3 : index
    %c0_229 = arith.constant 0 : index
    %c0_230 = arith.constant 0 : index
    %c0_231 = arith.constant 0 : index
    %217 = vector.load %arg7[%c3_228, %c0_229, %c0_230, %c0_231] : memref<4x2x1x128xf32, #tpu.memory_space<vmem>>, vector<1x1x1x128xf32>
    %218 = vector.shape_cast %217 : vector<1x1x1x128xf32> to vector<1x128xf32>
    %219 = vector.shape_cast %218 : vector<1x128xf32> to vector<1x1x128xf32>
    %220 = vector.broadcast %219 : vector<1x1x128xf32> to vector<2x2x128xf32>
    %221 = arith.addf %216, %220 : vector<2x2x128xf32>
    %cst_232 = arith.constant 0.000000e+00 : f32
    %222 = vector.broadcast %cst_232 : f32 to vector<2x2x128xf32>
    %223 = arith.maximumf %221, %222 : vector<2x2x128xf32>
    %c3_233 = arith.constant 3 : index
    %c0_234 = arith.constant 0 : index
    %c0_235 = arith.constant 0 : index
    %c0_236 = arith.constant 0 : index
    %224 = vector.load %arg4[%c3_233, %c0_234, %c0_235, %c0_236] : memref<4x2x384x128xbf16, #tpu.memory_space<vmem>>, vector<1x1x384x128xbf16>
    %225 = vector.shape_cast %224 : vector<1x1x384x128xbf16> to vector<384x128xbf16>
    %c3_237 = arith.constant 3 : index
    %c0_238 = arith.constant 0 : index
    %c0_239 = arith.constant 0 : index
    %c0_240 = arith.constant 0 : index
    %226 = vector.load %arg5[%c3_237, %c0_238, %c0_239, %c0_240] : memref<4x2x1x128xf32, #tpu.memory_space<vmem>>, vector<1x1x1x128xf32>
    %227 = vector.shape_cast %226 : vector<1x1x1x128xf32> to vector<1x128xf32>
    %c0_241 = arith.constant 0 : index
    %c1_242 = arith.constant 1 : index
    %c0_243 = arith.constant 0 : index
    %228 = vector.load %arg11[%c0_241, %c1_242, %c0_243] : memref<2x18x128xf32, #tpu.memory_space<vmem>>, vector<2x2x128xf32>
    tpu.vector_store %arg11[%c0_241, %c1_242, %c0_243], %223 {strides = array<i32>} : memref<2x18x128xf32, #tpu.memory_space<vmem>>, vector<2x2x128xf32>,
    %c0_244 = arith.constant 0 : index
    %c0_245 = arith.constant 0 : index
    %c0_246 = arith.constant 0 : index
    %229 = vector.load %arg11[%c0_244, %c0_245, %c0_246] : memref<2x18x128xf32, #tpu.memory_space<vmem>>, vector<2x2x128xf32>
    %230 = arith.truncf %229 : vector<2x2x128xf32> to vector<2x2x128xbf16>
    %231 = arith.truncf %223 : vector<2x2x128xf32> to vector<2x2x128xbf16>
    %c0_247 = arith.constant 0 : index
    %c2_248 = arith.constant 2 : index
    %c0_249 = arith.constant 0 : index
    %232 = vector.load %arg11[%c0_247, %c2_248, %c0_249] : memref<2x18x128xf32, #tpu.memory_space<vmem>>, vector<2x2x128xf32>
    %233 = arith.truncf %232 : vector<2x2x128xf32> to vector<2x2x128xbf16>
    %234 = tpu.concatenate %230, %231, %233 in 2 : vector<2x2x128xbf16>, vector<2x2x128xbf16>, vector<2x2x128xbf16> -> vector<2x2x384xbf16>
    %235 = vector.shape_cast %234 : vector<2x2x384xbf16> to vector<4x384xbf16>
    %cst_250 = arith.constant dense<0.000000e+00> : vector<4x128xf32>
    %236 = tpu.matmul %235, %225, %cst_250 {dimension_numbers = #tpu.dot_dimension_numbers<[1], [0], [0], [1], [0, 0, 1, 1], [], []>} : vector<4x384xbf16>, vector<384x128xbf16>, vector<4x128xf32> -> vector<4x128xf32>
    %237 = vector.broadcast %227 : vector<1x128xf32> to vector<4x128xf32>
    %238 = arith.addf %236, %237 : vector<4x128xf32>
    %239 = vector.shape_cast %238 : vector<4x128xf32> to vector<2x2x128xf32>
    %c3_251 = arith.constant 3 : index
    %c1_252 = arith.constant 1 : index
    %c0_253 = arith.constant 0 : index
    %c0_254 = arith.constant 0 : index
    %240 = vector.load %arg6[%c3_251, %c1_252, %c0_253, %c0_254] : memref<4x2x1x128xf32, #tpu.memory_space<vmem>>, vector<1x1x1x128xf32>
    %241 = vector.shape_cast %240 : vector<1x1x1x128xf32> to vector<1x128xf32>
    %242 = vector.shape_cast %241 : vector<1x128xf32> to vector<1x1x128xf32>
    %243 = vector.broadcast %242 : vector<1x1x128xf32> to vector<2x2x128xf32>
    %244 = arith.mulf %239, %243 : vector<2x2x128xf32>
    %c3_255 = arith.constant 3 : index
    %c1_256 = arith.constant 1 : index
    %c0_257 = arith.constant 0 : index
    %c0_258 = arith.constant 0 : index
    %245 = vector.load %arg7[%c3_255, %c1_256, %c0_257, %c0_258] : memref<4x2x1x128xf32, #tpu.memory_space<vmem>>, vector<1x1x1x128xf32>
    %246 = vector.shape_cast %245 : vector<1x1x1x128xf32> to vector<1x128xf32>
    %247 = vector.shape_cast %246 : vector<1x128xf32> to vector<1x1x128xf32>
    %248 = vector.broadcast %247 : vector<1x1x128xf32> to vector<2x2x128xf32>
    %249 = arith.addf %244, %248 : vector<2x2x128xf32>
    %cst_259 = arith.constant 0.000000e+00 : f32
    %250 = vector.broadcast %cst_259 : f32 to vector<2x2x128xf32>
    %251 = arith.maximumf %249, %250 : vector<2x2x128xf32>
    %c3_260 = arith.constant 3 : index
    %c1_261 = arith.constant 1 : index
    %c0_262 = arith.constant 0 : index
    %c0_263 = arith.constant 0 : index
    %252 = vector.load %arg4[%c3_260, %c1_261, %c0_262, %c0_263] : memref<4x2x384x128xbf16, #tpu.memory_space<vmem>>, vector<1x1x384x128xbf16>
    %253 = vector.shape_cast %252 : vector<1x1x384x128xbf16> to vector<384x128xbf16>
    %c3_264 = arith.constant 3 : index
    %c1_265 = arith.constant 1 : index
    %c0_266 = arith.constant 0 : index
    %c0_267 = arith.constant 0 : index
    %254 = vector.load %arg5[%c3_264, %c1_265, %c0_266, %c0_267] : memref<4x2x1x128xf32, #tpu.memory_space<vmem>>, vector<1x1x1x128xf32>
    %255 = vector.shape_cast %254 : vector<1x1x1x128xf32> to vector<1x128xf32>
    %c0_268 = arith.constant 0 : index
    %c1_269 = arith.constant 1 : index
    %c0_270 = arith.constant 0 : index
    %256 = vector.load %arg11[%c0_268, %c1_269, %c0_270] : memref<2x18x128xf32, #tpu.memory_space<vmem>>, vector<2x2x128xf32>
    tpu.vector_store %arg11[%c0_268, %c1_269, %c0_270], %251 {strides = array<i32>} : memref<2x18x128xf32, #tpu.memory_space<vmem>>, vector<2x2x128xf32>,
    %c0_271 = arith.constant 0 : index
    %c0_272 = arith.constant 0 : index
    %c0_273 = arith.constant 0 : index
    %257 = vector.load %arg11[%c0_271, %c0_272, %c0_273] : memref<2x18x128xf32, #tpu.memory_space<vmem>>, vector<2x2x128xf32>
    %258 = arith.truncf %257 : vector<2x2x128xf32> to vector<2x2x128xbf16>
    %259 = arith.truncf %251 : vector<2x2x128xf32> to vector<2x2x128xbf16>
    %c0_274 = arith.constant 0 : index
    %c2_275 = arith.constant 2 : index
    %c0_276 = arith.constant 0 : index
    %260 = vector.load %arg11[%c0_274, %c2_275, %c0_276] : memref<2x18x128xf32, #tpu.memory_space<vmem>>, vector<2x2x128xf32>
    %261 = arith.truncf %260 : vector<2x2x128xf32> to vector<2x2x128xbf16>
    %262 = tpu.concatenate %258, %259, %261 in 2 : vector<2x2x128xbf16>, vector<2x2x128xbf16>, vector<2x2x128xbf16> -> vector<2x2x384xbf16>
    %263 = vector.shape_cast %262 : vector<2x2x384xbf16> to vector<4x384xbf16>
    %cst_277 = arith.constant dense<0.000000e+00> : vector<4x128xf32>
    %264 = tpu.matmul %263, %253, %cst_277 {dimension_numbers = #tpu.dot_dimension_numbers<[1], [0], [0], [1], [0, 0, 1, 1], [], []>} : vector<4x384xbf16>, vector<384x128xbf16>, vector<4x128xf32> -> vector<4x128xf32>
    %265 = vector.broadcast %255 : vector<1x128xf32> to vector<4x128xf32>
    %266 = arith.addf %264, %265 : vector<4x128xf32>
    %267 = vector.shape_cast %266 : vector<4x128xf32> to vector<2x2x128xf32>
    %268 = arith.addf %267, %210 : vector<2x2x128xf32>
    %269 = vector.extract_strided_slice %268 {offsets = [0, 0, 0], sizes = [2, 1, 128], strides = [1, 1, 1]} : vector<2x2x128xf32> to vector<2x1x128xf32>
    %270 = vector.shape_cast %269 : vector<2x1x128xf32> to vector<2x128xf32>
    %271 = vector.extract_strided_slice %268 {offsets = [0, 1, 0], sizes = [2, 1, 128], strides = [1, 1, 1]} : vector<2x2x128xf32> to vector<2x1x128xf32>
    %272 = vector.shape_cast %271 : vector<2x1x128xf32> to vector<2x128xf32>
    %273 = tpu.concatenate %270, %272 in 1 : vector<2x128xf32>, vector<2x128xf32> -> vector<2x256xf32>
    %274 = arith.truncf %273 : vector<2x256xf32> to vector<2x256xbf16>
    %c0_278 = arith.constant 0 : index
    %c0_279 = arith.constant 0 : index
    %275 = vector.load %arg8[%c0_278, %c0_279] : memref<256x128xbf16, #tpu.memory_space<vmem>>, vector<256x128xbf16>
    %cst_280 = arith.constant dense<0.000000e+00> : vector<2x128xf32>
    %276 = tpu.matmul %274, %275, %cst_280 {dimension_numbers = #tpu.dot_dimension_numbers<[1], [0], [0], [1], [0, 0, 1, 1], [], []>} : vector<2x256xbf16>, vector<256x128xbf16>, vector<2x128xf32> -> vector<2x128xf32>
    %c0_281 = arith.constant 0 : index
    %c0_282 = arith.constant 0 : index
    %277 = vector.load %arg9[%c0_281, %c0_282] : memref<1x128xf32, #tpu.memory_space<vmem>>, vector<1x128xf32>
    %278 = vector.broadcast %277 : vector<1x128xf32> to vector<2x128xf32>
    %279 = arith.addf %276, %278 : vector<2x128xf32>
    %c0_283 = arith.constant 0 : index
    %c0_284 = arith.constant 0 : index
    %280 = vector.load %arg10[%c0_283, %c0_284] : memref<2x128xf32, #tpu.memory_space<vmem>>, vector<2x128xf32>
    tpu.vector_store %arg10[%c0_283, %c0_284], %279 {strides = array<i32>} : memref<2x128xf32, #tpu.memory_space<vmem>>, vector<2x128xf32>,
    return
  }
  func.func @transform_0(%arg0: i32) -> (i32, i32, i32) {
    %c0_i32 = arith.constant 0 : i32
    %c0_i32_0 = arith.constant 0 : i32
    %c0_i32_1 = arith.constant 0 : i32
    return %arg0, %c0_i32, %c0_i32_0 : i32, i32, i32
  }
  func.func @transform_1(%arg0: i32) -> (i32, i32) {
    %c0_i32 = arith.constant 0 : i32
    %c0_i32_0 = arith.constant 0 : i32
    %c0_i32_1 = arith.constant 0 : i32
    return %c0_i32, %c0_i32_0 : i32, i32
  }
  func.func @transform_2(%arg0: i32) -> (i32, i32) {
    %c0_i32 = arith.constant 0 : i32
    %c0_i32_0 = arith.constant 0 : i32
    %c0_i32_1 = arith.constant 0 : i32
    return %c0_i32, %c0_i32_0 : i32, i32
  }
  func.func @transform_3(%arg0: i32) -> (i32, i32, i32, i32) {
    %c0_i32 = arith.constant 0 : i32
    %c0_i32_0 = arith.constant 0 : i32
    %c0_i32_1 = arith.constant 0 : i32
    %c0_i32_2 = arith.constant 0 : i32
    %c0_i32_3 = arith.constant 0 : i32
    return %c0_i32, %c0_i32_0, %c0_i32_1, %c0_i32_2 : i32, i32, i32, i32
  }
  func.func @transform_4(%arg0: i32) -> (i32, i32, i32, i32) {
    %c0_i32 = arith.constant 0 : i32
    %c0_i32_0 = arith.constant 0 : i32
    %c0_i32_1 = arith.constant 0 : i32
    %c0_i32_2 = arith.constant 0 : i32
    %c0_i32_3 = arith.constant 0 : i32
    return %c0_i32, %c0_i32_0, %c0_i32_1, %c0_i32_2 : i32, i32, i32, i32
  }
  func.func @transform_5(%arg0: i32) -> (i32, i32, i32, i32) {
    %c0_i32 = arith.constant 0 : i32
    %c0_i32_0 = arith.constant 0 : i32
    %c0_i32_1 = arith.constant 0 : i32
    %c0_i32_2 = arith.constant 0 : i32
    %c0_i32_3 = arith.constant 0 : i32
    return %c0_i32, %c0_i32_0, %c0_i32_1, %c0_i32_2 : i32, i32, i32, i32
  }
  func.func @transform_6(%arg0: i32) -> (i32, i32, i32, i32) {
    %c0_i32 = arith.constant 0 : i32
    %c0_i32_0 = arith.constant 0 : i32
    %c0_i32_1 = arith.constant 0 : i32
    %c0_i32_2 = arith.constant 0 : i32
    %c0_i32_3 = arith.constant 0 : i32
    return %c0_i32, %c0_i32_0, %c0_i32_1, %c0_i32_2 : i32, i32, i32, i32
  }
  func.func @transform_7(%arg0: i32) -> (i32, i32) {
    %c0_i32 = arith.constant 0 : i32
    %c0_i32_0 = arith.constant 0 : i32
    %c0_i32_1 = arith.constant 0 : i32
    return %c0_i32, %c0_i32_0 : i32, i32
  }
  func.func @transform_8(%arg0: i32) -> (i32, i32) {
    %c0_i32 = arith.constant 0 : i32
    %c0_i32_0 = arith.constant 0 : i32
    %c0_i32_1 = arith.constant 0 : i32
    return %c0_i32, %c0_i32_0 : i32, i32
  }
  func.func @transform_9(%arg0: i32) -> (i32, i32) {
    %c0_i32 = arith.constant 0 : i32
    %c0_i32_0 = arith.constant 0 : i32
    return %arg0, %c0_i32 : i32, i32
  }
}

</mosaic_0001>

<bundles_post_ra>
// kernel: dpcnn_forward.1
= control target key start
LH: loop header
LB: loop body
LE: loop exit
PB: predicated region body
PF: predicated region fallthrough
CT: control target
= control target key end

     0   :  { %14 = vsyncpa [#allocation4], 0  ;;  %s5102_s0 = inlined_call_operand.vmem [shape: bf16[2,16,128], index: 0, kind: input, shape index: {}]   ;;  %s5103_s1 = inlined_call_operand.vmem [shape: bf16[384,128], index: 1, kind: input, shape index: {}]   ;;  %s5104_s2 = inlined_call_operand.vmem [shape: f32[1,128], index: 2, kind: input, shape index: {}]   ;;  %s5105_s3 = inlined_call_operand.hbm [shape: bf16[4,2,384,128], index: 3, kind: input, shape index: {}]   ;;  %s5106_s4 = inlined_call_operand.vmem [shape: f32[4,2,1,128], index: 4, kind: input, shape index: {}]   ;;  %s5107_s5 = inlined_call_operand.vmem [shape: f32[4,2,1,128], index: 5, kind: input, shape index: {}]   ;;  %s5108_s6 = inlined_call_operand.vmem [shape: f32[4,2,1,128], index: 6, kind: input, shape index: {}]   ;;  %s5109_s7 = inlined_call_operand.vmem [shape: bf16[256,128], index: 7, kind: input, shape index: {}]   ;;  %s5110_s8 = inlined_call_operand.vmem [shape: f32[1,128], index: 8, kind: input, shape index: {}]   ;;  %s5111_s9 = inlined_call_operand.hbm [shape: f32[2,128], index: 9, kind: output, shape index: {}]  }
   0x1   :  { %15 = vsyncpa [#allocation5], 0  ;;  %s4680_s30 = smov [#allocation3]   ;;  %s4632_s13 = scalar_lea.hbm %s5105_s3, 24576 }
   0x2   :  { %s27_s10 = sshll.u32 %s4680_s30, 4  ;;  %p4633_p0 = scmp.ne.s32.totalorder %s5105_s3, %s4632_s13  ;;  %s28_s10 = int_to_ptr.vmem [resolvable:$true] %s27_s10 }
   0x3   :  { %p4636_p1 = scmp.lt.u32.totalorder %s4632_s13, %s5105_s3 }
   0x5   :  { %p4638_p2 = pnand %p4636_p1, %p4633_p0 }
   0x7   :  { %4641 = shalt.err (!%p4638_p2)
}
   0x8   :  { %s4642_s18 = scalar_lea.vmem %s28_s10, 24576  ;;  %p4647_p4 = scmp.lt.s32.totalorder %s28_s10, %s28_s10 }
   0x9   :  { %p4643_p3 = scmp.ne.s32.totalorder %s28_s10, %s4642_s18  ;;  %p4648_p5 = scmp.lt.s32.totalorder %s4642_s18, %s4642_s18 }
   0xb   :  { %p4649_p6 = por %p4648_p5, %p4647_p4 }
   0xd   :  { %p4650_p7 = pnand %p4649_p6, %p4643_p3 }
   0xf   :  { %4653 = shalt.err (!%p4650_p7)
}
  0x10   :  { %s4681_s19 = smov 64   ;;  %s4682_s20 = smov 4  }
  0x11   :  { %33 = dma.hbm_to_vmem [thread:$0]  %s5105_s3, 24576, %s28_s10, [#allocation4], %s4681_s19, %s4681_s19, %s4682_s20  }
  0x12   :  { %4676 = dma.done.wait [#allocation4], 24576  }
  0x13   :  { %4677 = vsyncadd [#allocation4], 4294942720  ;;  %v4683_v0 = vmov 0.0   ;;  %v4396_v1 = vld [vmem:[%s5103_s1 + $0x40] sm:$0xff]   ;;  %v4398_v3 = vld [vmem:[%s5103_s1 + $0x48] sm:$0xff]   ;;  %vm4684_vm0 = vmmov 0  }
  0x14   :  { %48 = vst [vmem:[#allocation2] sm:$0x1] %v4683_v0  ;;  %49 = vst [vmem:[#allocation2 + $0x18] sm:$0x1] %v4683_v0  ;;  %v4397_v2 = vld [vmem:[%s5103_s1] sm:$0xff]   ;;  %3886 = vmatprep.subr.bf16.mxu0 %v4396_v1  ;;  %v4400_v5 = vld [vmem:[%s5103_s1 + $0x8] sm:$0xff]  }
  0x15   :  { %50 = vst [vmem:[#allocation2 + $0x11] sm:$0x1] %v4683_v0  ;;  %51 = vst [vmem:[#allocation2 + $0x29] sm:$0x1] %v4683_v0  ;;  %3887 = vmatpush3.bf16.msra.mxu0 %v4397_v2  ;;  %v4399_v4 = vld [vmem:[%s5103_s1 + $0x80] sm:$0xff]   ;;  %v4401_v6 = vld [vmem:[%s5103_s1 + $0x50] sm:$0xff]  }
  0x16   :  { %3888 = vmatprep.subr.bf16.mxu0 %v4398_v3  ;;  %4208 = vmatprep.subr.bf16.mxu1 %v4399_v4  ;;  %v4402_v7 = vld [vmem:[%s5103_s1 + $0x88] sm:$0xff]   ;;  %v4403_v8 = vld [vmem:[%s5103_s1 + $0x10] sm:$0xff]   ;;  %v4404_v9 = vld [vmem:[%s5103_s1 + $0x58] sm:$0xff]   ;;  %vm3375_vm1 = vcmask 1041409   ;;  %s4687_s10 = smov [#allocation6]  }
  0x17   :  { %4209 = vmatpush3.bf16.msra.mxu1 %v4399_v4  ;;  %v4405_v10 = vld [vmem:[%s5103_s1 + $0x90] sm:$0xff]   ;;  %v4406_v11 = vld [vmem:[%s5103_s1 + $0x18] sm:$0xff]   ;;  %v4407_v12 = vld [vmem:[%s5103_s1 + $0x60] sm:$0xff]   ;;  %s3572_s11 = sshll.u32 %s4687_s10, 4  ;;  %s3573_s11 = int_to_ptr.vmem [resolvable:$true] %s3572_s11 }
  0x18   :  { %4210 = vmatprep.subr.bf16.mxu1 %v4402_v7  ;;  %v4408_v13 = vld [vmem:[%s5103_s1 + $0x98] sm:$0xff]   ;;  %v4409_v14 = vld [vmem:[%s5103_s1 + $0x20] sm:$0xff]   ;;  %v4410_v16 = vld [vmem:[%s5103_s1 + $0x68] sm:$0xff]   ;;  %p4659_p9 = scmp.lt.s32.totalorder %s3573_s11, %s3573_s11 }
  0x19   :  { %3889 = vmatpush3.bf16.msra.mxu0 %v4400_v5  ;;  %v4411_v15 = vld [vmem:[%s5103_s1 + $0xa0] sm:$0xff]   ;;  %v4412_v17 = vld [vmem:[%s5103_s1 + $0x28] sm:$0xff]   ;;  %v4413_v19 = vld [vmem:[%s5103_s1 + $0x70] sm:$0xff]  }
  0x1a   :  { %3890 = vmatprep.subr.bf16.mxu0 %v4401_v6  ;;  %v4414_v18 = vld [vmem:[%s5103_s1 + $0xa8] sm:$0xff]   ;;  %v4415_v20 = vld [vmem:[%s5103_s1 + $0x30] sm:$0xff]   ;;  %v52_v22 = vld [vmem:[%s5102_s0] sm:$0xff]  }
  0x1b   :  { %4211 = vmatpush3.bf16.msra.mxu1 %v4402_v7  ;;  %v4417_v21 = vld [vmem:[%s5103_s1 + $0xb0] sm:$0xff]   ;;  %v4416_v23 = vld [vmem:[%s5103_s1 + $0x78] sm:$0xff]   ;;  %v56_v24 = vunpack.c.l.bf16 %v52_v22  ;;  %v57_v25 = vunpack.c.h.bf16 %v52_v22  ;;  %v54_v26 = vld [vmem:[%s5102_s0 + $0x8] sm:$0xff]   ;;  %319 = vmatprep.mubr.bf16.mxu0 %v52_v22 }
  0x1c   :  { %4212 = vmatprep.subr.bf16.mxu1 %v4405_v10  ;;  %v4418_v27 = vld [vmem:[%s5103_s1 + $0x38] sm:$0xff]   ;;  %v58_v29 = vunpack.c.l.bf16 %v54_v26  ;;  %v59_v30 = vunpack.c.h.bf16 %v54_v26  ;;  %v4422_v31 = vld [vmem:[#allocation3 + $0x40] sm:$0xff]   ;;  %v4426_v47 = vld [vmem:[#allocation3 + $0x50] sm:$0xff]  }
  0x1d   :  { %3891 = vmatpush3.bf16.msra.mxu0 %v4403_v8  ;;  %v4420_v28 = vld [vmem:[%s5103_s1 + $0xb8] sm:$0xff]   ;;  %109 = vst [vmem:[#allocation2 + $0x1] sm:$0xff] %v56_v24  ;;  %110 = vst [vmem:[#allocation2 + $0x9] sm:$0xff] %v57_v25  ;;  %v4423_v32 = vld [vmem:[#allocation3] sm:$0xff]  }
  0x1e   :  { %3892 = vmatprep.subr.bf16.mxu0 %v4404_v9  ;;  %111 = vst [vmem:[#allocation2 + $0x19] sm:$0xff] %v58_v29  ;;  %112 = vst [vmem:[#allocation2 + $0x21] sm:$0xff] %v59_v30  ;;  %v4424_v45 = vld [vmem:[#allocation3 + $0x48] sm:$0xff]   ;;  %v4427_v48 = vld [vmem:[#allocation3 + $0x80] sm:$0xff]  }
  0x1f   :  { %4213 = vmatpush3.bf16.msra.mxu1 %v4405_v10  ;;  %v4425_v46 = vld [vmem:[#allocation3 + $0x8] sm:$0xff]   ;;  %v4428_v49 = vld [vmem:[#allocation3 + $0x10] sm:$0xff]   ;;  %v4429_v50 = vld [vmem:[#allocation3 + $0x58] sm:$0xff]  }
  0x20   :  { %4214 = vmatprep.subr.bf16.mxu1 %v4408_v13  ;;  %v4430_v51 = vld [vmem:[#allocation3 + $0x88] sm:$0xff]   ;;  %v4431_v52 = vld [vmem:[#allocation3 + $0x18] sm:$0xff]   ;;  %v4432_v53 = vld [vmem:[#allocation3 + $0x60] sm:$0xff]  }
  0x21   :  { %3893 = vmatpush3.bf16.msra.mxu0 %v4406_v11  ;;  %v4433_v54 = vld [vmem:[#allocation3 + $0x90] sm:$0xff]   ;;  %v4434_v55 = vld [vmem:[#allocation3 + $0x20] sm:$0xff]   ;;  %v4435_v56 = vld [vmem:[#allocation3 + $0x68] sm:$0xff]  }
  0x22   :  { %3894 = vmatprep.subr.bf16.mxu0 %v4407_v12  ;;  %v4436_v57 = vld [vmem:[#allocation3 + $0x98] sm:$0xff]   ;;  %v4437_v58 = vld [vmem:[#allocation3 + $0x28] sm:$0xff]   ;;  %v4438_v59 = vld [vmem:[#allocation3 + $0x70] sm:$0xff]  }
  0x23   :  { %4215 = vmatpush3.bf16.msra.mxu1 %v4408_v13  ;;  %v4439_v60 = vld [vmem:[#allocation3 + $0xa0] sm:$0xff]   ;;  %v4440_v61 = vld [vmem:[#allocation3 + $0x30] sm:$0xff]   ;;  %v4441_v62 = vld [vmem:[#allocation3 + $0x78] sm:$0xff]  }
  0x24   :  { %4216 = vmatprep.subr.bf16.mxu1 %v4411_v15  ;;  %v113_v33 = vld [vmem:[#allocation2] sm:$0xff]  ;;  %v114_v35 = vld [vmem:[#allocation2 + $0x8] sm:$0xff]  ;;  %v4442_v63 = vld [vmem:[#allocation3 + $0xa8] sm:$0xff]  }
  0x25   :  { %3895 = vmatpush3.bf16.msra.mxu0 %v4409_v14  ;;  %v119_v34 = vld [vmem:[#allocation2 + $0x2] sm:$0xff]  ;;  %v117_v36 = vpack.c.bf16 %v114_v35, %v113_v33  ;;  %v120_v37 = vld [vmem:[#allocation2 + $0xa] sm:$0xff]  ;;  %v121_v38 = vld [vmem:[#allocation2 + $0x1a] sm:$0xff] }
  0x26   :  { %3896 = vmatprep.subr.bf16.mxu0 %v4410_v16  ;;  %v122_v39 = vld [vmem:[#allocation2 + $0x22] sm:$0xff]  ;;  %v123_v40 = vpack.c.bf16 %v120_v37, %v119_v34  ;;  %v115_v42 = vld [vmem:[#allocation2 + $0x18] sm:$0xff]  ;;  %v4446_v4 = vld [vmem:[#allocation3 + $0x100] sm:$0xff]  }
  0x27   :  { %4217 = vmatpush3.bf16.msra.mxu1 %v4411_v15  ;;  %v124_v41 = vpack.c.bf16 %v122_v39, %v121_v38  ;;  %v116_v43 = vld [vmem:[#allocation2 + $0x20] sm:$0xff]  ;;  %v4443_v1 = vld [vmem:[#allocation3 + $0x38] sm:$0xff]  }
  0x28   :  { %4218 = vmatprep.subr.bf16.mxu1 %v4414_v18  ;;  %4224 = vmatprep.mubr.bf16.mxu1 %v123_v40  ;;  %v118_v44 = vpack.c.bf16 %v116_v43, %v115_v42  ;;  %v4444_v2 = vld [vmem:[#allocation3 + $0xb0] sm:$0xff]   ;;  %v4445_v3 = vld [vmem:[#allocation3 + $0xb8] sm:$0xff]  }
  0x29   :  { %3897 = vmatpush3.bf16.msra.mxu0 %v4412_v17  ;;  %v3583_v7 = vld [vmem:[%s5104_s2] ss:$0 sm:$0xff]  ;;  %s4654_s2 = scalar_lea.vmem %s3573_s11, 32 }
  0x2a   :  { %3898 = vmatprep.subr.bf16.mxu0 %v4413_v19  ;;  %v3608_v19 = vld [vmem:[%s5107_s5] ss:$0 sm:$0xff]  ;;  %p4655_p8 = scmp.ne.s32.totalorder %s3573_s11, %s4654_s2  ;;  %p4660_p10 = scmp.lt.s32.totalorder %s4654_s2, %s4654_s2 }
  0x2b   :  { %4219 = vmatpush3.bf16.msra.mxu1 %v4414_v18 }
  0x2c   :  { %4220 = vmatprep.subr.bf16.mxu1 %v4417_v21  ;;  %p4661_p11 = por %p4660_p10, %p4659_p9 }
  0x2d   :  { %3899 = vmatpush3.bf16.msra.mxu0 %v4415_v20 }
  0x2e   :  { %3900 = vmatprep.subr.bf16.mxu0 %v4416_v23  ;;  %v3609_v23 = vld [vmem:[%s5108_s6] ss:$0 sm:$0xff]  ;;  %p4662_p12 = pnand %p4661_p11, %p4655_p8 }
  0x2f   :  { %4221 = vmatpush3.bf16.msra.mxu1 %v4417_v21 }
  0x30   :  { %4222 = vmatprep.subr.bf16.mxu1 %v4420_v28 }
  0x31   :  { %3901 = vmatpush3.bf16.msra.mxu0 %v4418_v27 }
  0x32   :  { %3924 = vmatprep.subr.bf16.mxu0 %v4422_v31 }
  0x33   :  { %4223 = vmatpush3.bf16.msra.mxu1 %v4420_v28 }
  0x34   :  { %320 = vmatmul.mubr.bf16.vlgmr.msra.gmra.mrb[0].mxu0 %v117_v36  ;;  %4228 = vmatprep.subr.bf16.mxu1 %v4427_v48 }
  0x35   :  { %327 = vmatprep.mubr.bf16.mxu0 %v54_v26  ;;  %3925 = vmatpush3.bf16.msra.mxu0 %v4423_v32 }
  0x36   :  { %4225 = vmatmul.mubr.bf16.vlgmr.msra.gmra.mrb[0].mxu1 %v124_v41  ;;  %3926 = vmatprep.subr.bf16.mxu0 %v4424_v45 }
  0x37   :  { %4229 = vmatpush3.bf16.msra.mxu1 %v4427_v48 }
  0x38   :  { %4230 = vmatprep.subr.bf16.mxu1 %v4430_v51 }
  0x39   :  { %3927 = vmatpush3.bf16.msra.mxu0 %v4425_v46 }
  0x3a   :  { %3928 = vmatprep.subr.bf16.mxu0 %v4426_v47 }
  0x3b   :  { %4231 = vmatpush3.bf16.msra.mxu1 %v4430_v51 }
  0x3c   :  { %328 = vmatmul.mubr.bf16.gmra.mrb[4].mxu0 %v118_v44  ;;  %4232 = vmatprep.subr.bf16.mxu1 %v4433_v54 }
  0x3d   :  { %3929 = vmatpush3.bf16.msra.mxu0 %v4428_v49 }
  0x3e   :  { %3930 = vmatprep.subr.bf16.mxu0 %v4429_v50  ;;  %v4447_v50 = vld [vmem:[#allocation3 + $0xc0] sm:$0xff]  }
  0x3f   :  { %4233 = vmatpush3.bf16.msra.mxu1 %v4433_v54 }
  0x40   :  { %4234 = vmatprep.subr.bf16.mxu1 %v4436_v57 }
  0x41   :  { %3931 = vmatpush3.bf16.msra.mxu0 %v4431_v52 }
  0x42   :  { %3932 = vmatprep.subr.bf16.mxu0 %v4432_v53 }
  0x43   :  { %4235 = vmatpush3.bf16.msra.mxu1 %v4436_v57 }
  0x44   :  { %4236 = vmatprep.subr.bf16.mxu1 %v4439_v60 }
  0x45   :  { %3933 = vmatpush3.bf16.msra.mxu0 %v4434_v55 }
  0x46   :  { %3934 = vmatprep.subr.bf16.mxu0 %v4435_v56 }
  0x47   :  { %4237 = vmatpush3.bf16.msra.mxu1 %v4439_v60 }
  0x48   :  { %4238 = vmatprep.subr.bf16.mxu1 %v4442_v63 }
  0x49   :  { %3935 = vmatpush3.bf16.msra.mxu0 %v4437_v58 }
  0x4a   :  { %3936 = vmatprep.subr.bf16.mxu0 %v4438_v59 }
  0x4b   :  { %4239 = vmatpush3.bf16.msra.mxu1 %v4442_v63  ;;  %v4448_v63 = vld [vmem:[#allocation3 + $0x108] sm:$0xff]  }
  0x4c   :  { %4240 = vmatprep.subr.bf16.mxu1 %v4444_v2 }
  0x4d   :  { %3937 = vmatpush3.bf16.msra.mxu0 %v4440_v61 }
  0x4e   :  { %3938 = vmatprep.subr.bf16.mxu0 %v4441_v62 }
  0x4f   :  { %4241 = vmatpush3.bf16.msra.mxu1 %v4444_v2  ;;  %v4450_v2 = vld [vmem:[#allocation3 + $0xc8] sm:$0xff]  }
  0x50   :  { %4242 = vmatprep.subr.bf16.mxu1 %v4445_v3 }
  0x51   :  { %3939 = vmatpush3.bf16.msra.mxu0 %v4443_v1  ;;  %v4449_v1 = vld [vmem:[#allocation3 + $0x140] sm:$0xff]  }
  0x52   :  { %3962 = vmatprep.subr.bf16.mxu0 %v4446_v4  ;;  %v4452_v4 = vld [vmem:[#allocation3 + $0x148] sm:$0xff]  }
  0x53   :  { %4243 = vmatpush3.bf16.msra.mxu1 %v4445_v3  ;;  %v4451_v3 = vld [vmem:[#allocation3 + $0x110] sm:$0xff]  }
  0x54   :  { %4248 = vmatprep.subr.bf16.mxu1 %v4449_v1 }
 0x107   :  { %v3902_v5 = vpop.f32.mrb[0].mxu0 }
 0x108   :  { %v3903_v6 = vpop.f32.mrb[1].mxu0 }
 0x109   :  { %v3904_v8 = vadd.f32 %v3903_v6, %v3902_v5  ;;  %v3905_v9 = vpop.f32.mrb[2].mxu0  ;;  %v4226_v10 = vpop.f32.mrb[0].mxu1  ;;  %v4453_v5 = vld [vmem:[#allocation3 + $0xd0] sm:$0xff]   ;;  %v4454_v6 = vld [vmem:[#allocation3 + $0x118] sm:$0xff]  }
 0x10a   :  { %v3906_v11 = vpop.f32.mrb[3].mxu0  ;;  %v370_v12 = vpop.f32.mrb[1].mxu1 }
 0x10b   :  { %v3907_v13 = vadd.f32 %v3906_v11, %v3905_v9  ;;  %v322_v14 = vadd.f32 %v3904_v8, %v3583_v7  ;;  %v4227_v15 = vpop.f32.mrb[2].mxu1  ;;  %v4456_v8 = vld [vmem:[#allocation3 + $0xd8] sm:$0xff]   ;;  %v4457_v9 = vld [vmem:[#allocation3 + $0x120] sm:$0xff]  }
 0x10c   :  { %v373_v16 = vpop.f32.mrb[3].mxu1  ;;  %v4459_v11 = vld [vmem:[#allocation3 + $0xe0] sm:$0xff]  }
 0x10d   :  { %v371_v17 = vadd.f32 %v370_v12, %v322_v14  ;;  %v325_v18 = vadd.f32 %v3907_v13, %v3583_v7  ;;  %v4460_v12 = vld [vmem:[#allocation3 + $0x128] sm:$0xff]   ;;  %v4461_v13 = vld [vmem:[#allocation3 + $0x160] sm:$0xff]  }
 0x10e   :  { %v4462_v14 = vld [vmem:[#allocation3 + $0xe8] sm:$0xff]  }
 0x10f   :  { %v385_v20 = vmax.f32 %v371_v17, 0.0  ;;  %v374_v21 = vadd.f32 %v373_v16, %v325_v18  ;;  %v3908_v22 = vpop.f32.mrb[4].mxu0  ;;  %v4464_v16 = vld [vmem:[#allocation3 + $0x168] sm:$0xff]   ;;  %v4465_v17 = vld [vmem:[#allocation3 + $0xf0] sm:$0xff]   ;;  %v4466_v18 = vld [vmem:[#allocation3 + $0x138] sm:$0xff]  }
 0x110   :  { %v3909_v24 = vpop.f32.mrb[5].mxu0 }
 0x111   :  { %v396_v25 = vmul.f32 %v3608_v19, %v385_v20  ;;  %v386_v26 = vmax.f32 %v374_v21, 0.0  ;;  %v3910_v27 = vadd.f32 %v3909_v24, %v3908_v22  ;;  %v3911_v28 = vpop.f32.mrb[6].mxu0  ;;  %v4468_v20 = vld [vmem:[#allocation3 + $0xf8] sm:$0xff]  }
 0x112   :  { %v3912_v29 = vpop.f32.mrb[7].mxu0  ;;  %v4469_v21 = vld [vmem:[#allocation3 + $0x178] sm:$0xff]  }
 0x113   :  { %v407_v30 = vadd.f32 %v3609_v23, %v396_v25  ;;  %v397_v31 = vmul.f32 %v3608_v19, %v386_v26  ;;  %v330_v32 = vadd.f32 %v3910_v27, %v3583_v7  ;;  %v3913_v33 = vadd.f32 %v3912_v29, %v3911_v28  ;;  %v3610_v28 = vld [vmem:[%s5106_s4] ss:$0 sm:$0xff] }
 0x115   :  { %v411_v34 = vmax.f32 %v407_v30, 0.0  ;;  %v408_v35 = vadd.f32 %v3609_v23, %v397_v31  ;;  %v379_v36 = vadd.f32 %v4226_v10, %v330_v32  ;;  %v333_v37 = vadd.f32 %v3913_v33, %v3583_v7  ;;  %v4455_v7 = vld [vmem:[#allocation3 + $0x150] sm:$0xff]   ;;  %v4458_v10 = vld [vmem:[#allocation3 + $0x158] sm:$0xff]  }
 0x116   :  { %v3636_v33 = vld [vmem:[%s5107_s5 + $0x1] ss:$0 sm:$0xff] }
 0x117   :  { %464 = vst [vmem:[#allocation2 + $0x1] sm:$0xff] %v411_v34  ;;  %v412_v38 = vmax.f32 %v408_v35, 0.0  ;;  %v387_v39 = vmax.f32 %v379_v36, 0.0  ;;  %v382_v40 = vadd.f32 %v4227_v15, %v333_v37  ;;  %v4463_v15 = vld [vmem:[#allocation3 + $0x130] sm:$0xff]  }
 0x119   :  { %465 = vst [vmem:[#allocation2 + $0x9] sm:$0xff] %v412_v38  ;;  %v398_v41 = vmul.f32 %v3608_v19, %v387_v39  ;;  %v388_v42 = vmax.f32 %v382_v40, 0.0  ;;  %v474_v43 = vpack.c.bf16 %v412_v38, %v411_v34  ;;  %v3638_v40 = vld [vmem:[%s5108_s6 + $0x1] ss:$0 sm:$0xff] }
 0x11b   :  { %v399_v44 = vmul.f32 %v3608_v19, %v388_v42  ;;  %664 = vmatprep.mubr.bf16.mxu0 %v474_v43  ;;  %v409_v45 = vadd.f32 %v3609_v23, %v398_v41  ;;  %v4467_v19 = vld [vmem:[#allocation3 + $0x170] sm:$0xff]  }
 0x11d   :  { %v410_v46 = vadd.f32 %v3609_v23, %v399_v44  ;;  %v413_v47 = vmax.f32 %v409_v45, 0.0 }
 0x11e   :  { %v468_v48 = vld [vmem:[#allocation2] sm:$0xff] }
 0x11f   :  { %v414_v49 = vmax.f32 %v410_v46, 0.0  ;;  %466 = vst [vmem:[#allocation2 + $0x19] sm:$0xff] %v413_v47 }
 0x120   :  { %v476_v51 = vld [vmem:[#allocation2 + $0x2] sm:$0xff]  ;;  %v477_v53 = vld [vmem:[#allocation2 + $0xa] sm:$0xff] }
 0x121   :  { %v469_v52 = vld [vmem:[#allocation2 + $0x8] sm:$0xff]  ;;  %v480_v55 = vpack.c.bf16 %v477_v53, %v476_v51  ;;  %467 = vst [vmem:[#allocation2 + $0x21] sm:$0xff] %v414_v49  ;;  %v475_v56 = vpack.c.bf16 %v414_v49, %v413_v47 }
 0x122   :  { %v472_v54 = vpack.c.bf16 %v469_v52, %v468_v48 }
 0x123   :  { %4244 = vmatprep.mubr.bf16.mxu1 %v480_v55 }
 0x124   :  { %665 = vmatmul.mubr.bf16.vlgmr.msra.gmra.mrb[8].mxu0 %v472_v54 }
 0x125   :  { %672 = vmatprep.mubr.bf16.mxu0 %v475_v56  ;;  %3963 = vmatpush3.bf16.msra.mxu0 %v4447_v50 }
 0x126   :  { %v470_v57 = vld [vmem:[#allocation2 + $0x18] sm:$0xff]  ;;  %3964 = vmatprep.subr.bf16.mxu0 %v4448_v63 }
 0x128   :  { %v478_v58 = vld [vmem:[#allocation2 + $0x1a] sm:$0xff]  ;;  %v479_v60 = vld [vmem:[#allocation2 + $0x22] sm:$0xff] }
 0x129   :  { %v471_v59 = vld [vmem:[#allocation2 + $0x20] sm:$0xff]  ;;  %v481_v62 = vpack.c.bf16 %v479_v60, %v478_v58  ;;  %3965 = vmatpush3.bf16.msra.mxu0 %v4450_v2 }
 0x12a   :  { %v473_v61 = vpack.c.bf16 %v471_v59, %v470_v57  ;;  %3966 = vmatprep.subr.bf16.mxu0 %v4451_v3 }
 0x12b   :  { %4245 = vmatmul.mubr.bf16.vlgmr.msra.gmra.mrb[4].mxu1 %v481_v62 }
 0x12c   :  { %673 = vmatmul.mubr.bf16.gmra.mrb[12].mxu0 %v473_v61  ;;  %4249 = vmatpush3.bf16.msra.mxu1 %v4449_v1 }
 0x12d   :  { %4250 = vmatprep.subr.bf16.mxu1 %v4452_v4  ;;  %3967 = vmatpush3.bf16.msra.mxu0 %v4453_v5 }
 0x12e   :  { %3968 = vmatprep.subr.bf16.mxu0 %v4454_v6 }
 0x130   :  { %4251 = vmatpush3.bf16.msra.mxu1 %v4452_v4 }
 0x131   :  { %4252 = vmatprep.subr.bf16.mxu1 %v4455_v7  ;;  %3969 = vmatpush3.bf16.msra.mxu0 %v4456_v8 }
 0x132   :  { %3970 = vmatprep.subr.bf16.mxu0 %v4457_v9 }
 0x134   :  { %4253 = vmatpush3.bf16.msra.mxu1 %v4455_v7 }
 0x135   :  { %4254 = vmatprep.subr.bf16.mxu1 %v4458_v10  ;;  %3971 = vmatpush3.bf16.msra.mxu0 %v4459_v11 }
 0x136   :  { %3972 = vmatprep.subr.bf16.mxu0 %v4460_v12  ;;  %v4470_v12 = vld [vmem:[#allocation3 + $0x1c0] sm:$0xff]  }
 0x138   :  { %4255 = vmatpush3.bf16.msra.mxu1 %v4458_v10 }
 0x139   :  { %4256 = vmatprep.subr.bf16.mxu1 %v4461_v13  ;;  %3973 = vmatpush3.bf16.msra.mxu0 %v4462_v14  ;;  %v4472_v14 = vld [vmem:[#allocation3 + $0x200] sm:$0xff]  }
 0x13a   :  { %3974 = vmatprep.subr.bf16.mxu0 %v4463_v15  ;;  %v4473_v15 = vld [vmem:[#allocation3 + $0x1c8] sm:$0xff]  }
 0x13c   :  { %4257 = vmatpush3.bf16.msra.mxu1 %v4461_v13  ;;  %v4471_v13 = vld [vmem:[#allocation3 + $0x180] sm:$0xff]  }
 0x13d   :  { %4258 = vmatprep.subr.bf16.mxu1 %v4464_v16  ;;  %3975 = vmatpush3.bf16.msra.mxu0 %v4465_v17  ;;  %v4475_v17 = vld [vmem:[#allocation3 + $0x208] sm:$0xff]  }
 0x13e   :  { %3976 = vmatprep.subr.bf16.mxu0 %v4466_v18  ;;  %v4476_v18 = vld [vmem:[#allocation3 + $0x1d0] sm:$0xff]  }
 0x140   :  { %4259 = vmatpush3.bf16.msra.mxu1 %v4464_v16  ;;  %v4474_v16 = vld [vmem:[#allocation3 + $0x188] sm:$0xff]  }
 0x141   :  { %4260 = vmatprep.subr.bf16.mxu1 %v4467_v19  ;;  %3977 = vmatpush3.bf16.msra.mxu0 %v4468_v20  ;;  %v4478_v20 = vld [vmem:[#allocation3 + $0x210] sm:$0xff]  }
 0x142   :  { %4000 = vmatprep.subr.bf16.mxu0 %v4470_v12 }
 0x144   :  { %4261 = vmatpush3.bf16.msra.mxu1 %v4467_v19  ;;  %v4477_v19 = vld [vmem:[#allocation3 + $0x190] sm:$0xff]  }
 0x145   :  { %4262 = vmatprep.subr.bf16.mxu1 %v4469_v21 }
 0x148   :  { %4263 = vmatpush3.bf16.msra.mxu1 %v4469_v21  ;;  %v4479_v21 = vld [vmem:[#allocation3 + $0x1d8] sm:$0xff]  }
 0x149   :  { %4268 = vmatprep.subr.bf16.mxu1 %v4683_v0 }
 0x1f7   :  { %v3940_v22 = vpop.f32.mrb[8].mxu0 }
 0x1f8   :  { %v3941_v23 = vpop.f32.mrb[9].mxu0 }
 0x1f9   :  { %v3942_v24 = vadd.f32 %v3941_v23, %v3940_v22  ;;  %v3943_v25 = vpop.f32.mrb[10].mxu0  ;;  %v4480_v22 = vld [vmem:[#allocation3 + $0x198] sm:$0xff]  }
 0x1fa   :  { %v3944_v26 = vpop.f32.mrb[11].mxu0  ;;  %v4481_v23 = vld [vmem:[#allocation3 + $0x218] sm:$0xff]  }
 0x1fb   :  { %v3945_v27 = vadd.f32 %v3944_v26, %v3943_v25  ;;  %v667_v31 = vadd.f32 %v3942_v24, %v3610_v28  ;;  %v4482_v24 = vld [vmem:[#allocation3 + $0x1e0] sm:$0xff]  }
 0x1fc   :  { %v4483_v25 = vld [vmem:[#allocation3 + $0x1a0] sm:$0xff]  }
 0x1fd   :  { %v670_v39 = vadd.f32 %v3945_v27, %v3610_v28  ;;  %v4484_v26 = vld [vmem:[#allocation3 + $0x220] sm:$0xff]   ;;  %v4485_v27 = vld [vmem:[#allocation3 + $0x1e8] sm:$0xff]  }
 0x1fe   :  { %v4246_v30 = vpop.f32.mrb[4].mxu1 }
 0x1ff   :  { %v3946_v29 = vpop.f32.mrb[12].mxu0  ;;  %v715_v34 = vpop.f32.mrb[5].mxu1 }
 0x200   :  { %v3947_v32 = vpop.f32.mrb[13].mxu0  ;;  %v716_v36 = vadd.f32 %v715_v34, %v667_v31  ;;  %v4247_v38 = vpop.f32.mrb[6].mxu1  ;;  %v4489_v31 = vld [vmem:[#allocation3 + $0x1b0] sm:$0xff]   ;;  %v4492_v34 = vld [vmem:[#allocation3 + $0x1b8] sm:$0xff]  }
 0x201   :  { %v3948_v35 = vadd.f32 %v3947_v32, %v3946_v29  ;;  %v3949_v37 = vpop.f32.mrb[14].mxu0  ;;  %v718_v42 = vpop.f32.mrb[7].mxu1  ;;  %v4487_v29 = vld [vmem:[#allocation3 + $0x228] sm:$0xff]   ;;  %v4490_v32 = vld [vmem:[#allocation3 + $0x230] sm:$0xff]  }
 0x202   :  { %v3950_v41 = vpop.f32.mrb[15].mxu0  ;;  %v738_v44 = vmul.f32 %v3636_v33, %v716_v36  ;;  %v719_v46 = vadd.f32 %v718_v42, %v670_v39  ;;  %v4494_v36 = vld [vmem:[#allocation3 + $0x280] sm:$0xff]   ;;  %v3640_v39 = vld [vmem:[%s5106_s4 + $0x1] ss:$0 sm:$0xff] }
 0x203   :  { %v675_v43 = vadd.f32 %v3948_v35, %v3610_v28  ;;  %v3951_v45 = vadd.f32 %v3950_v41, %v3949_v37  ;;  %v4493_v35 = vld [vmem:[#allocation3 + $0x238] sm:$0xff]  }
 0x204   :  { %v750_v48 = vadd.f32 %v3638_v40, %v738_v44  ;;  %v739_v50 = vmul.f32 %v3636_v33, %v719_v46 }
 0x205   :  { %v724_v47 = vadd.f32 %v4246_v30, %v675_v43  ;;  %v678_v49 = vadd.f32 %v3951_v45, %v3610_v28  ;;  %v4486_v28 = vld [vmem:[#allocation3 + $0x1a8] sm:$0xff]   ;;  %v4488_v30 = vld [vmem:[#allocation3 + $0x1f0] sm:$0xff]  }
 0x206   :  { %v754_v52 = vmax.f32 %v750_v48, 0.0  ;;  %v751_v54 = vadd.f32 %v3638_v40, %v739_v50 }
 0x207   :  { %v740_v51 = vmul.f32 %v3636_v33, %v724_v47  ;;  %v727_v53 = vadd.f32 %v4247_v38, %v678_v49 }
 0x208   :  { %809 = vst [vmem:[#allocation2 + $0x1] sm:$0xff] %v754_v52  ;;  %v755_v56 = vmax.f32 %v751_v54, 0.0 }
 0x209   :  { %v741_v55 = vmul.f32 %v3636_v33, %v727_v53  ;;  %v752_v57 = vadd.f32 %v3638_v40, %v740_v51  ;;  %v4491_v33 = vld [vmem:[#allocation3 + $0x1f8] sm:$0xff]  }
 0x20a   :  { %810 = vst [vmem:[#allocation2 + $0x9] sm:$0xff] %v755_v56  ;;  %v819_v58 = vpack.c.bf16 %v755_v56, %v754_v52 }
 0x20b   :  { %v753_v59 = vadd.f32 %v3638_v40, %v741_v55  ;;  %v756_v60 = vmax.f32 %v752_v57, 0.0 }
 0x20c   :  { %1009 = vmatprep.mubr.bf16.mxu0 %v819_v58 }
 0x20d   :  { %v757_v61 = vmax.f32 %v753_v59, 0.0  ;;  %811 = vst [vmem:[#allocation2 + $0x19] sm:$0xff] %v756_v60 }
 0x20f   :  { %v820_v62 = vpack.c.bf16 %v757_v61, %v756_v60  ;;  %812 = vst [vmem:[#allocation2 + $0x21] sm:$0xff] %v757_v61  ;;  %v813_v63 = vld [vmem:[#allocation2] sm:$0xff] }
 0x211   :  { %v814_v1 = vld [vmem:[#allocation2 + $0x8] sm:$0xff] }
 0x212   :  { %v821_v2 = vld [vmem:[#allocation2 + $0x2] sm:$0xff]  ;;  %v822_v3 = vld [vmem:[#allocation2 + $0xa] sm:$0xff]  ;;  %v817_v4 = vpack.c.bf16 %v814_v1, %v813_v63 }
 0x213   :  { %v825_v5 = vpack.c.bf16 %v822_v3, %v821_v2  ;;  %v3666_v3 = vld [vmem:[%s5107_s5 + $0x2] ss:$0 sm:$0xff] }
 0x214   :  { %1010 = vmatmul.mubr.bf16.vlgmr.msra.gmra.mrb[16].mxu0 %v817_v4  ;;  %v815_v10 = vld [vmem:[#allocation2 + $0x18] sm:$0xff] }
 0x215   :  { %4264 = vmatprep.mubr.bf16.mxu1 %v825_v5  ;;  %1017 = vmatprep.mubr.bf16.mxu0 %v820_v62  ;;  %v3668_v5 = vld [vmem:[%s5108_s6 + $0x2] ss:$0 sm:$0xff] }
 0x216   :  { %v823_v6 = vld [vmem:[#allocation2 + $0x1a] sm:$0xff]  ;;  %v824_v7 = vld [vmem:[#allocation2 + $0x22] sm:$0xff]  ;;  %4001 = vmatpush3.bf16.msra.mxu0 %v4471_v13 }
 0x217   :  { %v826_v8 = vpack.c.bf16 %v824_v7, %v823_v6  ;;  %v816_v9 = vld [vmem:[#allocation2 + $0x20] sm:$0xff]  ;;  %4002 = vmatprep.subr.bf16.mxu0 %v4473_v15 }
 0x218   :  { %v818_v11 = vpack.c.bf16 %v816_v9, %v815_v10 }
 0x219   :  { %4265 = vmatmul.mubr.bf16.vlgmr.msra.gmra.mrb[8].mxu1 %v826_v8 }
 0x21a   :  { %4269 = vmatpush3.bf16.msra.mxu1 %v4472_v14  ;;  %4003 = vmatpush3.bf16.msra.mxu0 %v4474_v16 }
 0x21b   :  { %4270 = vmatprep.subr.bf16.mxu1 %v4683_v0  ;;  %4004 = vmatprep.subr.bf16.mxu0 %v4476_v18 }
 0x21c   :  { %1018 = vmatmul.mubr.bf16.gmra.mrb[20].mxu0 %v818_v11  ;;  %4284 = vmatprep.mubr.msk.bf16.mxu1 %vm4684_vm0, %v4683_v0 }
 0x21e   :  { %4271 = vmatpush3.bf16.msra.mxu1 %v4475_v17  ;;  %4005 = vmatpush3.bf16.msra.mxu0 %v4477_v19  ;;  %v4495_v19 = vld [vmem:[#allocation3 + $0x240] sm:$0xff]  }
 0x21f   :  { %4272 = vmatprep.subr.bf16.mxu1 %v4683_v0  ;;  %4006 = vmatprep.subr.bf16.mxu0 %v4479_v21 }
 0x222   :  { %4273 = vmatpush3.bf16.msra.mxu1 %v4478_v20  ;;  %4007 = vmatpush3.bf16.msra.mxu0 %v4480_v22  ;;  %v4496_v20 = vld [vmem:[#allocation3 + $0x2c0] sm:$0xff]  }
 0x223   :  { %4274 = vmatprep.subr.bf16.mxu1 %v4683_v0  ;;  %4008 = vmatprep.subr.bf16.mxu0 %v4482_v24 }
 0x226   :  { %4275 = vmatpush3.bf16.msra.mxu1 %v4481_v23  ;;  %4009 = vmatpush3.bf16.msra.mxu0 %v4483_v25 }
 0x227   :  { %4276 = vmatprep.subr.bf16.mxu1 %v4683_v0  ;;  %4010 = vmatprep.subr.bf16.mxu0 %v4485_v27  ;;  %v4498_v27 = vld [vmem:[#allocation3 + $0x248] sm:$0xff]  }
 0x22a   :  { %4277 = vmatpush3.bf16.msra.mxu1 %v4484_v26  ;;  %4011 = vmatpush3.bf16.msra.mxu0 %v4486_v28  ;;  %v4497_v26 = vld [vmem:[#allocation3 + $0x288] sm:$0xff]  }
 0x22b   :  { %4278 = vmatprep.subr.bf16.mxu1 %v4683_v0  ;;  %4012 = vmatprep.subr.bf16.mxu0 %v4488_v30  ;;  %v4499_v28 = vld [vmem:[#allocation3 + $0x2c8] sm:$0xff]   ;;  %v4501_v30 = vld [vmem:[#allocation3 + $0x250] sm:$0xff]  }
 0x22e   :  { %4279 = vmatpush3.bf16.msra.mxu1 %v4487_v29  ;;  %4013 = vmatpush3.bf16.msra.mxu0 %v4489_v31  ;;  %v4500_v29 = vld [vmem:[#allocation3 + $0x290] sm:$0xff]  }
 0x22f   :  { %4280 = vmatprep.subr.bf16.mxu1 %v4683_v0  ;;  %4014 = vmatprep.subr.bf16.mxu0 %v4491_v33  ;;  %v4502_v31 = vld [vmem:[#allocation3 + $0x2d0] sm:$0xff]   ;;  %v4504_v33 = vld [vmem:[#allocation3 + $0x258] sm:$0xff]  }
 0x232   :  { %4281 = vmatpush3.bf16.msra.mxu1 %v4490_v32  ;;  %4015 = vmatpush3.bf16.msra.mxu0 %v4492_v34  ;;  %v4503_v32 = vld [vmem:[#allocation3 + $0x298] sm:$0xff]  }
 0x233   :  { %4282 = vmatprep.subr.bf16.mxu1 %v4683_v0  ;;  %4031 = vmatprep.subr.bf16.mxu0 %v4494_v36  ;;  %v4505_v34 = vld [vmem:[#allocation3 + $0x2d8] sm:$0xff]   ;;  %v4507_v36 = vld [vmem:[#allocation3 + $0x260] sm:$0xff]  }
 0x236   :  { %4283 = vmatpush3.bf16.msra.mxu1 %v4493_v35  ;;  %v4506_v35 = vld [vmem:[#allocation3 + $0x2a0] sm:$0xff]  }
 0x237   :  { %4288 = vmatprep.subr.bf16.mxu1 %v4683_v0 }
 0x2e7   :  { %v3978_v37 = vpop.f32.mrb[16].mxu0 }
 0x2e8   :  { %v3979_v38 = vpop.f32.mrb[17].mxu0 }
 0x2e9   :  { %v3980_v40 = vadd.f32 %v3979_v38, %v3978_v37  ;;  %v3981_v41 = vpop.f32.mrb[18].mxu0  ;;  %v4508_v37 = vld [vmem:[#allocation3 + $0x2e0] sm:$0xff]   ;;  %v4509_v38 = vld [vmem:[#allocation3 + $0x2a8] sm:$0xff]  }
 0x2ea   :  { %v3982_v42 = vpop.f32.mrb[19].mxu0 }
 0x2eb   :  { %v3983_v43 = vadd.f32 %v3982_v42, %v3981_v41  ;;  %v1012_v45 = vadd.f32 %v3980_v40, %v3640_v39  ;;  %v4511_v40 = vld [vmem:[#allocation3 + $0x2e8] sm:$0xff]   ;;  %v4512_v41 = vld [vmem:[#allocation3 + $0x2b0] sm:$0xff]  }
 0x2ec   :  { %v4266_v44 = vpop.f32.mrb[8].mxu1  ;;  %v4513_v42 = vld [vmem:[#allocation3 + $0x270] sm:$0xff]  }
 0x2ed   :  { %v1060_v46 = vpop.f32.mrb[9].mxu1  ;;  %v1015_v49 = vadd.f32 %v3983_v43, %v3640_v39  ;;  %v4514_v43 = vld [vmem:[#allocation3 + $0x2f0] sm:$0xff]  }
 0x2ee   :  { %v1061_v47 = vadd.f32 %v1060_v46, %v1012_v45  ;;  %v4267_v48 = vpop.f32.mrb[10].mxu1  ;;  %v4516_v45 = vld [vmem:[#allocation3 + $0x278] sm:$0xff]  }
 0x2ef   :  { %v1063_v50 = vpop.f32.mrb[11].mxu1  ;;  %v3984_v52 = vpop.f32.mrb[20].mxu0  ;;  %v4517_v46 = vld [vmem:[#allocation3 + $0x2f8] sm:$0xff]  }
 0x2f0   :  { %1075 = vst [vmem:[#allocation2 + $0x1] sm:$0xff] %v1061_v47  ;;  %v1064_v51 = vadd.f32 %v1063_v50, %v1015_v49  ;;  %v3985_v53 = vpop.f32.mrb[21].mxu0  ;;  %v3670_v49 = vld [vmem:[%s5106_s4 + $0x2] ss:$0 sm:$0xff] }
 0x2f1   :  { %v3986_v54 = vadd.f32 %v3985_v53, %v3984_v52  ;;  %v3987_v55 = vpop.f32.mrb[22].mxu0 }
 0x2f2   :  { %1076 = vst [vmem:[#allocation2 + $0x9] sm:$0xff] %v1064_v51  ;;  %v3988_v56 = vpop.f32.mrb[23].mxu0 }
 0x2f3   :  { %v1020_v57 = vadd.f32 %v3986_v54, %v3640_v39  ;;  %v3989_v58 = vadd.f32 %v3988_v56, %v3987_v55 }
 0x2f5   :  { %v1069_v59 = vadd.f32 %v4266_v44, %v1020_v57  ;;  %v1023_v60 = vadd.f32 %v3989_v58, %v3640_v39  ;;  %v4510_v39 = vld [vmem:[#allocation3 + $0x268] sm:$0xff]   ;;  %v4515_v44 = vld [vmem:[#allocation3 + $0x2b8] sm:$0xff]  }
 0x2f7   :  { %1077 = vst [vmem:[#allocation2 + $0x19] sm:$0xff] %v1069_v59  ;;  %v1072_v61 = vadd.f32 %v4267_v48, %v1023_v60  ;;  %v3699_v59 = vld [vmem:[%s5107_s5 + $0x3] ss:$0 sm:$0xff] }
 0x2f9   :  { %v1080_v62 = vld [vmem:[#allocation2 + $0x1] ss:$2 sm:$0xff]  ;;  %v1084_v63 = vld [vmem:[#allocation2 + $0x2] ss:$2 sm:$0xff]  ;;  %1078 = vst [vmem:[#allocation2 + $0x21] sm:$0xff] %v1072_v61 }
 0x2fa   :  { %v1088_v1 = vld [vmem:[#allocation2 + $0x3] ss:$2 sm:$0xff]  ;;  %v1091_v2 = vmax.f32 %v1080_v62, %v1084_v63 }
 0x2fb   :  { %1095 = vst [vmem:[#allocation2 + $0x9] sm:$0x1] %v4683_v0  ;;  %v3701_v62 = vld [vmem:[%s5108_s6 + $0x3] ss:$0 sm:$0xff] }
 0x2fc   :  { %v4868_v4 = vmax.f32 %v1091_v2, %v1088_v1 }
 0x2fe   :  { %v1105_v6 = vmul.f32 %v3666_v3, %v4868_v4 }
 0x300   :  { %v1115_v7 = vadd.f32 %v3668_v5, %v1105_v6  ;;  %v1082_v8 = vld [vmem:[#allocation2 + $0x19] ss:$2 sm:$0xff]  ;;  %v1086_v9 = vld [vmem:[#allocation2 + $0x1a] ss:$2 sm:$0xff] }
 0x301   :  { %v1090_v10 = vld [vmem:[#allocation2 + $0x1b] ss:$2 sm:$0xff]  ;;  %v1092_v11 = vmax.f32 %v1082_v8, %v1086_v9 }
 0x302   :  { %v1117_v12 = vmax.f32 %v1115_v7, 0.0  ;;  %1096 = vst [vmem:[#allocation2 + $0x21] sm:$0x1] %v4683_v0 }
 0x303   :  { %v4875_v13 = vmax.f32 %v1092_v11, %v1090_v10 }
 0x304   :  { %1170 = vst [vmem:[#allocation2 + $0x1] sm:$0xff] %v1117_v12 }
 0x305   :  { %v1106_v14 = vmul.f32 %v3666_v3, %v4875_v13 }
 0x307   :  { %v1116_v15 = vadd.f32 %v3668_v5, %v1106_v14 }
 0x309   :  { %v1118_v16 = vmax.f32 %v1116_v15, 0.0 }
 0x30b   :  { %v3881_v17 = vpack.c.bf16 %v1118_v16, %v1117_v12  ;;  %1171 = vst [vmem:[#allocation2 + $0x19] sm:$0xff] %v1118_v16  ;;  %v1172_v18 = vld [vmem:[#allocation2] sm:$0xff]  ;;  %v4518_v16 = vld [vmem:[#allocation3 + $0x380] sm:$0xff]  }
 0x30c   :  { %v1178_v22 = vld [vmem:[#allocation2 + $0x2] sm:$0xff] }
 0x30d   :  { %1382 = vmatprep.mubr.bf16.mxu0 %v3881_v17  ;;  %v4519_v17 = vld [vmem:[#allocation3 + $0x340] sm:$0xff]  }
 0x312   :  { %v1173_v21 = vld [vmem:[#allocation2 + $0x18] sm:$0xff] }
 0x313   :  { %v1179_v23 = vld [vmem:[#allocation2 + $0x1a] sm:$0xff]  ;;  %v3880_v24 = vpack.c.bf16 %v1173_v21, %v1172_v18  ;;  %v4520_v18 = vld [vmem:[#allocation3 + $0x300] sm:$0xff]  }
 0x314   :  { %v3882_v25 = vpack.c.bf16 %v1179_v23, %v1178_v22  ;;  %v4523_v21 = vld [vmem:[#allocation3 + $0x308] sm:$0xff]   ;;  %v4525_v22 = vld [vmem:[#allocation3 + $0x350] sm:$0xff]  }
 0x315   :  { %1383 = vmatmul.mubr.bf16.vlgmr.msra.gmra.mrb[24].mxu0 %v3880_v24  ;;  %v4524_v23 = vld [vmem:[#allocation3 + $0x390] sm:$0xff]  }
 0x316   :  { %4285 = vmatmul.mubr.bf16.vlgmr.msra.gmra.mrb[12].mxu1 %v3882_v25  ;;  %4032 = vmatpush3.bf16.msra.mxu0 %v4495_v19  ;;  %v4522_v19 = vld [vmem:[#allocation3 + $0x348] sm:$0xff]   ;;  %v4526_v24 = vld [vmem:[#allocation3 + $0x310] sm:$0xff]   ;;  %v4528_v25 = vld [vmem:[#allocation3 + $0x358] sm:$0xff]  }
 0x317   :  { %4289 = vmatpush3.bf16.msra.mxu1 %v4496_v20  ;;  %4033 = vmatprep.subr.bf16.mxu0 %v4497_v26  ;;  %v4521_v20 = vld [vmem:[#allocation3 + $0x388] sm:$0xff]   ;;  %v4527_v26 = vld [vmem:[#allocation3 + $0x398] sm:$0xff]  }
 0x318   :  { %4290 = vmatprep.subr.bf16.mxu1 %v4683_v0  ;;  %4304 = vmatprep.mubr.msk.bf16.mxu1 %vm4684_vm0, %v4683_v0 }
 0x31a   :  { %4034 = vmatpush3.bf16.msra.mxu0 %v4498_v27  ;;  %v4529_v27 = vld [vmem:[#allocation3 + $0x318] sm:$0xff]  }
 0x31b   :  { %4291 = vmatpush3.bf16.msra.mxu1 %v4499_v28  ;;  %4035 = vmatprep.subr.bf16.mxu0 %v4500_v29  ;;  %v4531_v28 = vld [vmem:[#allocation3 + $0x360] sm:$0xff]  }
 0x31c   :  { %4292 = vmatprep.subr.bf16.mxu1 %v4683_v0  ;;  %v4530_v29 = vld [vmem:[#allocation3 + $0x3a0] sm:$0xff]  }
 0x31e   :  { %4036 = vmatpush3.bf16.msra.mxu0 %v4501_v30  ;;  %v4532_v30 = vld [vmem:[#allocation3 + $0x320] sm:$0xff]  }
 0x31f   :  { %4293 = vmatpush3.bf16.msra.mxu1 %v4502_v31  ;;  %4037 = vmatprep.subr.bf16.mxu0 %v4503_v32  ;;  %v4534_v31 = vld [vmem:[#allocation3 + $0x368] sm:$0xff]  }
 0x320   :  { %4294 = vmatprep.subr.bf16.mxu1 %v4683_v0  ;;  %v4533_v32 = vld [vmem:[#allocation3 + $0x3a8] sm:$0xff]  }
 0x322   :  { %4038 = vmatpush3.bf16.msra.mxu0 %v4504_v33  ;;  %v4535_v33 = vld [vmem:[#allocation3 + $0x328] sm:$0xff]  }
 0x323   :  { %4295 = vmatpush3.bf16.msra.mxu1 %v4505_v34  ;;  %4039 = vmatprep.subr.bf16.mxu0 %v4506_v35  ;;  %v4537_v34 = vld [vmem:[#allocation3 + $0x370] sm:$0xff]  }
 0x324   :  { %4296 = vmatprep.subr.bf16.mxu1 %v4683_v0  ;;  %v4536_v35 = vld [vmem:[#allocation3 + $0x3b0] sm:$0xff]  }
 0x326   :  { %4040 = vmatpush3.bf16.msra.mxu0 %v4507_v36  ;;  %v4538_v36 = vld [vmem:[#allocation3 + $0x330] sm:$0xff]  }
 0x327   :  { %4297 = vmatpush3.bf16.msra.mxu1 %v4508_v37  ;;  %4041 = vmatprep.subr.bf16.mxu0 %v4509_v38  ;;  %v4540_v37 = vld [vmem:[#allocation3 + $0x378] sm:$0xff]  }
 0x328   :  { %4298 = vmatprep.subr.bf16.mxu1 %v4683_v0  ;;  %v4539_v38 = vld [vmem:[#allocation3 + $0x3b8] sm:$0xff]  }
 0x32a   :  { %4042 = vmatpush3.bf16.msra.mxu0 %v4510_v39  ;;  %v4541_v39 = vld [vmem:[#allocation3 + $0x338] sm:$0xff]  }
 0x32b   :  { %4299 = vmatpush3.bf16.msra.mxu1 %v4511_v40  ;;  %4043 = vmatprep.subr.bf16.mxu0 %v4512_v41 }
 0x32c   :  { %4300 = vmatprep.subr.bf16.mxu1 %v4683_v0 }
 0x32e   :  { %4044 = vmatpush3.bf16.msra.mxu0 %v4513_v42  ;;  %v3703_v42 = vld [vmem:[%s5106_s4 + $0x3] ss:$0 sm:$0xff] }
 0x32f   :  { %4301 = vmatpush3.bf16.msra.mxu1 %v4514_v43  ;;  %4045 = vmatprep.subr.bf16.mxu0 %v4515_v44 }
 0x330   :  { %4302 = vmatprep.subr.bf16.mxu1 %v4683_v0 }
 0x332   :  { %4046 = vmatpush3.bf16.msra.mxu0 %v4516_v45 }
 0x333   :  { %4303 = vmatpush3.bf16.msra.mxu1 %v4517_v46  ;;  %4062 = vmatprep.subr.bf16.mxu0 %v4519_v17 }
 0x334   :  { %4308 = vmatprep.subr.bf16.mxu1 %v4683_v0 }
 0x3e8   :  { %v4016_v47 = vpop.f32.mrb[24].mxu0 }
 0x3e9   :  { %v1425_v48 = vpop.f32.mrb[12].mxu1  ;;  %v4017_v50 = vpop.f32.mrb[25].mxu0 }
 0x3ea   :  { %v4286_v51 = vpop.f32.mrb[13].mxu1  ;;  %v4018_v52 = vadd.f32 %v4017_v50, %v4016_v47  ;;  %v4019_v53 = vpop.f32.mrb[26].mxu0 }
 0x3eb   :  { %v1428_v54 = vpop.f32.mrb[14].mxu1  ;;  %v4020_v55 = vpop.f32.mrb[27].mxu0 }
 0x3ec   :  { %v4287_v56 = vpop.f32.mrb[15].mxu1  ;;  %v1385_v57 = vadd.f32 %v4018_v52, %v3670_v49  ;;  %v4021_v58 = vadd.f32 %v4020_v55, %v4019_v53 }
 0x3ee   :  { %v1426_v60 = vadd.f32 %v1425_v48, %v1385_v57  ;;  %v1388_v61 = vadd.f32 %v4021_v58, %v3670_v49 }
 0x3f0   :  { %v1440_v63 = vmul.f32 %v3699_v59, %v1426_v60  ;;  %v1429_v1 = vadd.f32 %v1428_v54, %v1388_v61  ;;  %v3732_v61 = vld [vmem:[%s5107_s5 + $0x4] ss:$0 sm:$0xff] }
 0x3f2   :  { %v1441_v2 = vmul.f32 %v3699_v59, %v1429_v1  ;;  %v1450_v3 = vadd.f32 %v3701_v62, %v1440_v63 }
 0x3f4   :  { %v1451_v5 = vadd.f32 %v3701_v62, %v1441_v2  ;;  %v1452_v6 = vmax.f32 %v1450_v3, 0.0 }
 0x3f6   :  { %v1453_v7 = vmax.f32 %v1451_v5, 0.0  ;;  %1505 = vst [vmem:[#allocation2 + $0x1] sm:$0xff] %v1452_v6 }
 0x3f8   :  { %v3884_v8 = vpack.c.bf16 %v1453_v7, %v1452_v6  ;;  %1506 = vst [vmem:[#allocation2 + $0x19] sm:$0xff] %v1453_v7 }
 0x3fa   :  { %1717 = vmatprep.mubr.bf16.mxu0 %v3884_v8 }
 0x3fd   :  { %v1507_v9 = vld [vmem:[#allocation2] sm:$0xff] }
 0x3fe   :  { %v1513_v11 = vld [vmem:[#allocation2 + $0x2] sm:$0xff] }
 0x3ff   :  { %v1508_v10 = vld [vmem:[#allocation2 + $0x18] sm:$0xff] }
 0x400   :  { %v1514_v12 = vld [vmem:[#allocation2 + $0x1a] sm:$0xff]  ;;  %v3883_v14 = vpack.c.bf16 %v1508_v10, %v1507_v9 }
 0x401   :  { %v3885_v15 = vpack.c.bf16 %v1514_v12, %v1513_v11  ;;  %v4685_v11 = vmov 1983009808  }
 0x402   :  { %1718 = vmatmul.mubr.bf16.vlgmr.msra.gmra.mrb[28].mxu0 %v3883_v14  ;;  %v1878_v12 = vunpack.c.l.s4 %v4685_v11  ;;  %v1880_v14 = vlaneseq }
 0x403   :  { %4305 = vmatmul.mubr.bf16.vlgmr.msra.gmra.mrb[16].mxu1 %v3885_v15  ;;  %4063 = vmatpush3.bf16.msra.mxu0 %v4520_v18 }
 0x404   :  { %4324 = vmatprep.mubr.msk.bf16.mxu1 %vm4684_vm0, %v4683_v0  ;;  %4309 = vmatpush3.bf16.msra.mxu1 %v4518_v16  ;;  %v1879_v15 = vunpack.c.0.s8 %v1878_v12  ;;  %v4926_v16 = vshrl.u32 %v1880_v14, 7 }
 0x405   :  { %4310 = vmatprep.subr.bf16.mxu1 %v4683_v0  ;;  %4064 = vmatprep.subr.bf16.mxu0 %v4522_v19 }
 0x407   :  { %4065 = vmatpush3.bf16.msra.mxu0 %v4523_v21 }
 0x408   :  { %4311 = vmatpush3.bf16.msra.mxu1 %v4521_v20  ;;  %4066 = vmatprep.subr.bf16.mxu0 %v4525_v22  ;;  %v4929_v20 = vsub.s32 %v1879_v15, %v4926_v16 }
 0x409   :  { %4312 = vmatprep.subr.bf16.mxu1 %v4683_v0 }
 0x40b   :  { %4067 = vmatpush3.bf16.msra.mxu0 %v4526_v24 }
 0x40c   :  { %4313 = vmatpush3.bf16.msra.mxu1 %v4524_v23  ;;  %4068 = vmatprep.subr.bf16.mxu0 %v4528_v25 }
 0x40d   :  { %4314 = vmatprep.subr.bf16.mxu1 %v4683_v0 }
 0x40f   :  { %4069 = vmatpush3.bf16.msra.mxu0 %v4529_v27 }
 0x410   :  { %4315 = vmatpush3.bf16.msra.mxu1 %v4527_v26  ;;  %4070 = vmatprep.subr.bf16.mxu0 %v4531_v28 }
 0x411   :  { %4316 = vmatprep.subr.bf16.mxu1 %v4683_v0 }
 0x413   :  { %4071 = vmatpush3.bf16.msra.mxu0 %v4532_v30 }
 0x414   :  { %4317 = vmatpush3.bf16.msra.mxu1 %v4530_v29  ;;  %4072 = vmatprep.subr.bf16.mxu0 %v4534_v31 }
 0x415   :  { %4318 = vmatprep.subr.bf16.mxu1 %v4683_v0 }
 0x417   :  { %4073 = vmatpush3.bf16.msra.mxu0 %v4535_v33 }
 0x418   :  { %4319 = vmatpush3.bf16.msra.mxu1 %v4533_v32  ;;  %4074 = vmatprep.subr.bf16.mxu0 %v4537_v34 }
 0x419   :  { %4320 = vmatprep.subr.bf16.mxu1 %v4683_v0 }
 0x41b   :  { %4075 = vmatpush3.bf16.msra.mxu0 %v4538_v36  ;;  %v4543_v36 = vld [vmem:[#allocation3 + $0x400] sm:$0xff]  }
 0x41c   :  { %4321 = vmatpush3.bf16.msra.mxu1 %v4536_v35  ;;  %4076 = vmatprep.subr.bf16.mxu0 %v4540_v37  ;;  %v4542_v35 = vld [vmem:[#allocation3 + $0x440] sm:$0xff]  }
 0x41d   :  { %4322 = vmatprep.subr.bf16.mxu1 %v4683_v0  ;;  %v4544_v37 = vld [vmem:[#allocation3 + $0x3c0] sm:$0xff]  }
 0x41f   :  { %4077 = vmatpush3.bf16.msra.mxu0 %v4541_v39  ;;  %v4546_v39 = vld [vmem:[#allocation3 + $0x408] sm:$0xff]  }
 0x420   :  { %4323 = vmatpush3.bf16.msra.mxu1 %v4539_v38  ;;  %4093 = vmatprep.subr.bf16.mxu0 %v4543_v36  ;;  %v4545_v38 = vld [vmem:[#allocation3 + $0x448] sm:$0xff]  }
 0x421   :  { %4328 = vmatprep.subr.bf16.mxu1 %v4683_v0 }
 0x4d5   :  { %v4047_v40 = vpop.f32.mrb[28].mxu0 }
 0x4d6   :  { %v1760_v41 = vpop.f32.mrb[16].mxu1  ;;  %v4048_v43 = vpop.f32.mrb[29].mxu0 }
 0x4d7   :  { %v4306_v44 = vpop.f32.mrb[17].mxu1  ;;  %v4049_v45 = vadd.f32 %v4048_v43, %v4047_v40  ;;  %v4050_v46 = vpop.f32.mrb[30].mxu0  ;;  %v4547_v40 = vld [vmem:[#allocation3 + $0x3c8] sm:$0xff]   ;;  %v4550_v43 = vld [vmem:[#allocation3 + $0x3d0] sm:$0xff]  }
 0x4d8   :  { %v1763_v47 = vpop.f32.mrb[18].mxu1  ;;  %v4051_v48 = vpop.f32.mrb[31].mxu0  ;;  %v4551_v44 = vld [vmem:[#allocation3 + $0x458] sm:$0xff]  }
 0x4d9   :  { %v4307_v49 = vpop.f32.mrb[19].mxu1  ;;  %v1720_v50 = vadd.f32 %v4049_v45, %v3703_v42  ;;  %v4052_v51 = vadd.f32 %v4051_v48, %v4050_v46  ;;  %v4552_v45 = vld [vmem:[#allocation3 + $0x418] sm:$0xff]   ;;  %v4555_v48 = vld [vmem:[#allocation3 + $0x420] sm:$0xff]  }
 0x4da   :  { %v4553_v46 = vld [vmem:[#allocation3 + $0x3d8] sm:$0xff]   ;;  %v4556_v49 = vld [vmem:[#allocation3 + $0x3e0] sm:$0xff]  }
 0x4db   :  { %v1761_v52 = vadd.f32 %v1760_v41, %v1720_v50  ;;  %v1723_v53 = vadd.f32 %v4052_v51, %v3703_v42  ;;  %v4548_v41 = vld [vmem:[#allocation3 + $0x450] sm:$0xff]   ;;  %v4557_v50 = vld [vmem:[#allocation3 + $0x468] sm:$0xff]  }
 0x4dc   :  { %v4549_v42 = vld [vmem:[#allocation3 + $0x410] sm:$0xff]   ;;  %v4558_v51 = vld [vmem:[#allocation3 + $0x428] sm:$0xff]  }
 0x4dd   :  { %v1767_v54 = vadd.f32 %v1761_v52, %v4868_v4  ;;  %v1764_v55 = vadd.f32 %v1763_v47, %v1723_v53  ;;  %v4554_v47 = vld [vmem:[#allocation3 + $0x460] sm:$0xff]   ;;  %v4559_v52 = vld [vmem:[#allocation3 + $0x3e8] sm:$0xff]   ;;  %v4560_v53 = vld [vmem:[#allocation3 + $0x470] sm:$0xff]  }
 0x4df   :  { %1769 = vst [vmem:[#allocation2 + $0x1] sm:$0xff] %v1767_v54  ;;  %v1768_v56 = vadd.f32 %v1764_v55, %v4875_v13  ;;  %v3734_v13 = vld [vmem:[%s5108_s6 + $0x4] ss:$0 sm:$0xff] }
 0x4e0   :  { %v4561_v54 = vld [vmem:[#allocation3 + $0x430] sm:$0xff]  }
 0x4e1   :  { %1770 = vst [vmem:[#allocation2 + $0x19] sm:$0xff] %v1768_v56  ;;  %v4562_v55 = vld [vmem:[#allocation3 + $0x3f0] sm:$0xff]   ;;  %v4563_v56 = vld [vmem:[#allocation3 + $0x478] sm:$0xff]  }
 0x4e6   :  { %v1771_v57 = vld [vmem:[#allocation2 + $0x1] ss:$2 sm:$0xf]  ;;  %v1774_v58 = vld [vmem:[#allocation2 + $0x2] ss:$2 sm:$0xf] }
 0x4e7   :  { %v1777_v59 = vld [vmem:[#allocation2 + $0x3] ss:$2 sm:$0xf]  ;;  %v1779_v60 = vmax.f32 %v1771_v57, %v1774_v58 }
 0x4e8   :  { %v1772_v62 = vld [vmem:[#allocation2 + $0x19] ss:$2 sm:$0xf]  ;;  %v1776_v63 = vld [vmem:[#allocation2 + $0x1a] ss:$2 sm:$0xf] }
 0x4e9   :  { %1783 = vst [vmem:[#allocation2 + $0x5] sm:$0x1] %v4683_v0  ;;  %v1778_v1 = vld [vmem:[#allocation2 + $0x1b] ss:$2 sm:$0xf]  ;;  %v1780_v2 = vmax.f32 %v1772_v62, %v1776_v63  ;;  %v4916_v4 = vmax.f32 %v1779_v60, %v1777_v59  ;;  %v4564_v57 = vld [vmem:[#allocation3 + $0x438] sm:$0xff]  }
 0x4ea   :  { %1784 = vst [vmem:[#allocation2 + $0x1d] sm:$0x1] %v4683_v0  ;;  %v4565_v58 = vld [vmem:[#allocation3 + $0x3f8] sm:$0xff]  }
 0x4eb   :  { %v4922_v3 = vmax.f32 %v1780_v2, %v1778_v1  ;;  %v1793_v5 = vmul.f32 %v3732_v61, %v4916_v4  ;;  %v3738_v1 = vld [vmem:[%s5106_s4 + $0x4] ss:$0 sm:$0xff] }
 0x4ed   :  { %v1794_v6 = vmul.f32 %v3732_v61, %v4922_v3  ;;  %v1803_v7 = vadd.f32 %v3734_v13, %v1793_v5 }
 0x4ef   :  { %v1804_v8 = vadd.f32 %v3734_v13, %v1794_v6  ;;  %v1805_v9 = vmax.f32 %v1803_v7, 0.0 }
 0x4f1   :  { %v1806_v10 = vmax.f32 %v1804_v8, 0.0  ;;  %1858 = vst [vmem:[#allocation2 + $0x1] sm:$0xf] %v1805_v9  ;;  %v3766_v8 = vld [vmem:[%s5107_s5 + $0x5] ss:$0 sm:$0xff] }
 0x4f3   :  { %1859 = vst [vmem:[#allocation2 + $0x19] sm:$0xf] %v1806_v10 }
 0x4f8   :  { %v1866_v17 = vld [vmem:[#allocation2 + $0x2] sm:$0xf] }
 0x4f9   :  { %v1860_v18 = vld [vmem:[#allocation2] sm:$0xf]  ;;  %v1868_v19 = vpack.c.bf16 %v1866_v17, %v1866_v17 }
 0x4fa   :  { %v3736_v21 = vpack.c.bf16 %v1805_v9, %v1860_v18  ;;  %v1867_v22 = vld [vmem:[#allocation2 + $0x1a] sm:$0xf] }
 0x4fb   :  { %v1861_v23 = vld [vmem:[#allocation2 + $0x18] sm:$0xf]  ;;  %v1869_v24 = vpack.c.bf16 %v1867_v22, %v1867_v22  ;;  %v1890_v26 = vrot.slane %v1868_v19, %v4929_v20 }
 0x4fc   :  { %v3737_v25 = vpack.c.bf16 %v1806_v10, %v1861_v23  ;;  %v1883_v28 = vrot.slane %v3736_v21, %v4929_v20  ;;  %v3768_v10 = vld [vmem:[%s5108_s6 + $0x5] ss:$0 sm:$0xff] }
 0x4fd   :  { %v1906_v27 = vrot.slane %v1869_v24, %v4929_v20 }
 0x4fe   :  { %v1899_v29 = vrot.slane %v3737_v25, %v4929_v20 }
 0x4ff   :  { %v3740_v30 = vcombine.low %v1890_v26, %v1906_v27 }
 0x500   :  { %v3739_v31 = vcombine.low %v1883_v28, %v1899_v29 }
 0x501   :  { %v1929_v32 = vrot.slane %v3740_v30, %v4929_v20 }
 0x502   :  { %v1922_v33 = vrot.slane %v3739_v31, %v4929_v20 }
 0x503   :  { %4325 = vmatmul.mubr.bf16.vlgmr.msra.gmra.mrb[20].mxu1 %v1929_v32 }
 0x504   :  { %v1930_v34 = vcombine.high %v1922_v33, %v1922_v33  ;;  %4344 = vmatprep.mubr.msk.bf16.mxu1 %vm4684_vm0, %v4683_v0  ;;  %4329 = vmatpush3.bf16.msra.mxu1 %v4542_v35 }
 0x505   :  { %4330 = vmatprep.subr.bf16.mxu1 %v4683_v0 }
 0x506   :  { %2110 = vmatprep.mubr.bf16.mxu0 %v1930_v34 }
 0x507   :  { %2111 = vmatmul.mubr.bf16.vlgmr.msra.gmra.mrb[32].mxu0 %v1922_v33 }
 0x508   :  { %4094 = vmatpush3.bf16.msra.mxu0 %v4544_v37  ;;  %4331 = vmatpush3.bf16.msra.mxu1 %v4545_v38  ;;  %v4566_v38 = vld [vmem:[#allocation3 + $0x4c0] sm:$0xff]  }
 0x509   :  { %4332 = vmatprep.subr.bf16.mxu1 %v4683_v0  ;;  %4095 = vmatprep.subr.bf16.mxu0 %v4546_v39  ;;  %v4567_v39 = vld [vmem:[#allocation3 + $0x500] sm:$0xff]  }
 0x50c   :  { %4096 = vmatpush3.bf16.msra.mxu0 %v4547_v40  ;;  %4333 = vmatpush3.bf16.msra.mxu1 %v4548_v41  ;;  %v4568_v40 = vld [vmem:[#allocation3 + $0x480] sm:$0xff]   ;;  %v4569_v41 = vld [vmem:[#allocation3 + $0x4c8] sm:$0xff]  }
 0x50d   :  { %4334 = vmatprep.subr.bf16.mxu1 %v4683_v0  ;;  %4097 = vmatprep.subr.bf16.mxu0 %v4549_v42  ;;  %v4570_v42 = vld [vmem:[#allocation3 + $0x508] sm:$0xff]  }
 0x510   :  { %4098 = vmatpush3.bf16.msra.mxu0 %v4550_v43  ;;  %4335 = vmatpush3.bf16.msra.mxu1 %v4551_v44  ;;  %v4571_v43 = vld [vmem:[#allocation3 + $0x488] sm:$0xff]   ;;  %v4572_v44 = vld [vmem:[#allocation3 + $0x4d0] sm:$0xff]  }
 0x511   :  { %4336 = vmatprep.subr.bf16.mxu1 %v4683_v0  ;;  %4099 = vmatprep.subr.bf16.mxu0 %v4552_v45  ;;  %v4573_v45 = vld [vmem:[#allocation3 + $0x510] sm:$0xff]  }
 0x514   :  { %4100 = vmatpush3.bf16.msra.mxu0 %v4553_v46  ;;  %4337 = vmatpush3.bf16.msra.mxu1 %v4554_v47  ;;  %v4574_v46 = vld [vmem:[#allocation3 + $0x490] sm:$0xff]   ;;  %v4575_v47 = vld [vmem:[#allocation3 + $0x4d8] sm:$0xff]  }
 0x515   :  { %4338 = vmatprep.subr.bf16.mxu1 %v4683_v0  ;;  %4101 = vmatprep.subr.bf16.mxu0 %v4555_v48  ;;  %v4576_v48 = vld [vmem:[#allocation3 + $0x518] sm:$0xff]  }
 0x518   :  { %4102 = vmatpush3.bf16.msra.mxu0 %v4556_v49  ;;  %4339 = vmatpush3.bf16.msra.mxu1 %v4557_v50  ;;  %v4577_v49 = vld [vmem:[#allocation3 + $0x498] sm:$0xff]   ;;  %v4578_v50 = vld [vmem:[#allocation3 + $0x4e0] sm:$0xff]  }
 0x519   :  { %4340 = vmatprep.subr.bf16.mxu1 %v4683_v0  ;;  %4103 = vmatprep.subr.bf16.mxu0 %v4558_v51  ;;  %v4579_v51 = vld [vmem:[#allocation3 + $0x520] sm:$0xff]  }
 0x51c   :  { %4104 = vmatpush3.bf16.msra.mxu0 %v4559_v52  ;;  %4341 = vmatpush3.bf16.msra.mxu1 %v4560_v53  ;;  %v4580_v52 = vld [vmem:[#allocation3 + $0x4a0] sm:$0xff]   ;;  %v4581_v53 = vld [vmem:[#allocation3 + $0x4e8] sm:$0xff]  }
 0x51d   :  { %4105 = vmatprep.subr.bf16.mxu0 %v4561_v54  ;;  %4342 = vmatprep.subr.bf16.mxu1 %v4683_v0  ;;  %v4582_v54 = vld [vmem:[#allocation3 + $0x528] sm:$0xff]  }
 0x520   :  { %4106 = vmatpush3.bf16.msra.mxu0 %v4562_v55  ;;  %4343 = vmatpush3.bf16.msra.mxu1 %v4563_v56  ;;  %v4583_v55 = vld [vmem:[#allocation3 + $0x4a8] sm:$0xff]   ;;  %v4584_v56 = vld [vmem:[#allocation3 + $0x4f0] sm:$0xff]  }
 0x521   :  { %4107 = vmatprep.subr.bf16.mxu0 %v4564_v57  ;;  %4348 = vmatprep.subr.bf16.mxu1 %v4683_v0  ;;  %v4585_v57 = vld [vmem:[#allocation3 + $0x530] sm:$0xff]  }
 0x524   :  { %4108 = vmatpush3.bf16.msra.mxu0 %v4565_v58  ;;  %v4586_v58 = vld [vmem:[#allocation3 + $0x4b0] sm:$0xff]  }
 0x525   :  { %4124 = vmatprep.subr.bf16.mxu0 %v4566_v38 }
 0x5d6   :  { %v2152_v59 = vpop.f32.mrb[20].mxu1 }
 0x5d7   :  { %v4326_v60 = vpop.f32.mrb[21].mxu1 }
 0x5d8   :  { %v2155_v61 = vpop.f32.mrb[22].mxu1  ;;  %v4588_v60 = vld [vmem:[#allocation3 + $0x538] sm:$0xff]  }
 0x5d9   :  { %v4327_v63 = vpop.f32.mrb[23].mxu1  ;;  %v4589_v61 = vld [vmem:[#allocation3 + $0x4b8] sm:$0xff]  }
 0x5da   :  { %v4078_v62 = vpop.f32.mrb[32].mxu0 }
 0x5db   :  { %v4079_v2 = vpop.f32.mrb[33].mxu0 }
 0x5dc   :  { %v4080_v13 = vadd.f32 %v4079_v2, %v4078_v62  ;;  %v4081_v5 = vpop.f32.mrb[34].mxu0 }
 0x5dd   :  { %v4082_v6 = vpop.f32.mrb[35].mxu0  ;;  %v3772_v5 = vld [vmem:[%s5106_s4 + $0x5] ss:$0 sm:$0xff] }
 0x5de   :  { %v2113_v7 = vadd.f32 %v4080_v13, %v3738_v1 }
 0x5e0   :  { %v2153_v9 = vadd.f32 %v2152_v59, %v2113_v7  ;;  %v4587_v59 = vld [vmem:[#allocation3 + $0x4f8] sm:$0xff]  }
 0x5e2   :  { %v2159_v11 = vcombine.high %v2153_v9, %v2153_v9  ;;  %v2169_v12 = vmul.f32 %v3766_v8, %v2153_v9 }
 0x5e4   :  { %v2170_v14 = vmul.f32 %v3766_v8, %v2159_v11  ;;  %v2179_v15 = vadd.f32 %v3768_v10, %v2169_v12 }
 0x5e6   :  { %v2180_v17 = vadd.f32 %v3768_v10, %v2170_v14  ;;  %v2181_v18 = vmax.f32 %v2179_v15, 0.0 }
 0x5e8   :  { %v2182_v19 = vmax.f32 %v2180_v17, 0.0  ;;  %2234 = vst [vmem:[#allocation2 + $0x1] sm:$0xf] %v2181_v18 }
 0x5ea   :  { %2235 = vst [vmem:[#allocation2 + $0x19] sm:$0xf] %v2182_v19 }
 0x5ef   :  { %v2236_v21 = vld [vmem:[#allocation2] sm:$0xf] }
 0x5f0   :  { %v2242_v22 = vld [vmem:[#allocation2 + $0x2] sm:$0xf]  ;;  %v3770_v23 = vpack.c.bf16 %v2181_v18, %v2236_v21 }
 0x5f1   :  { %v2244_v24 = vpack.c.bf16 %v2242_v22, %v2242_v22  ;;  %v2243_v25 = vld [vmem:[#allocation2 + $0x1a] sm:$0xf]  ;;  %v3800_v22 = vld [vmem:[%s5107_s5 + $0x6] ss:$0 sm:$0xff] }
 0x5f2   :  { %v2237_v26 = vld [vmem:[#allocation2 + $0x18] sm:$0xf]  ;;  %v2245_v27 = vpack.c.bf16 %v2243_v25, %v2243_v25  ;;  %v2259_v31 = vrot.slane %v3770_v23, %v4929_v20 }
 0x5f3   :  { %v3771_v28 = vpack.c.bf16 %v2182_v19, %v2237_v26  ;;  %v2266_v29 = vrot.slane %v2244_v24, %v4929_v20 }
 0x5f4   :  { %v2282_v30 = vrot.slane %v2245_v27, %v4929_v20 }
 0x5f5   :  { %v2275_v32 = vrot.slane %v3771_v28, %v4929_v20 }
 0x5f6   :  { %v3774_v33 = vcombine.low %v2266_v29, %v2282_v30 }
 0x5f7   :  { %v3773_v34 = vcombine.low %v2259_v31, %v2275_v32  ;;  %v4686_v31 = vmov 1966171168  }
 0x5f8   :  { %v2305_v35 = vrot.slane %v3774_v33, %v4929_v20  ;;  %v2646_v32 = vunpack.c.l.s4 %v4686_v31 }
 0x5f9   :  { %v2298_v36 = vrot.slane %v3773_v34, %v4929_v20 }
 0x5fa   :  { %4345 = vmatmul.mubr.bf16.vlgmr.msra.gmra.mrb[24].mxu1 %v2305_v35 }
 0x5fb   :  { %v2306_v37 = vcombine.high %v2298_v36, %v2298_v36  ;;  %4364 = vmatprep.mubr.msk.bf16.mxu1 %vm4684_vm0, %v4683_v0  ;;  %4349 = vmatpush3.bf16.msra.mxu1 %v4567_v39 }
 0x5fc   :  { %4350 = vmatprep.subr.bf16.mxu1 %v4683_v0 }
 0x5fd   :  { %2486 = vmatprep.mubr.bf16.mxu0 %v2306_v37 }
 0x5fe   :  { %2487 = vmatmul.mubr.bf16.vlgmr.msra.gmra.mrb[36].mxu0 %v2298_v36  ;;  %v2647_v36 = vunpack.c.0.s8 %v2646_v32 }
 0x5ff   :  { %4125 = vmatpush3.bf16.msra.mxu0 %v4568_v40  ;;  %4351 = vmatpush3.bf16.msra.mxu1 %v4570_v42 }
 0x600   :  { %4126 = vmatprep.subr.bf16.mxu0 %v4569_v41  ;;  %4352 = vmatprep.subr.bf16.mxu1 %v4683_v0  ;;  %v4992_v37 = vsub.s32 %v2647_v36, %v4926_v16 }
 0x603   :  { %4127 = vmatpush3.bf16.msra.mxu0 %v4571_v43  ;;  %4353 = vmatpush3.bf16.msra.mxu1 %v4573_v45 }
 0x604   :  { %4128 = vmatprep.subr.bf16.mxu0 %v4572_v44  ;;  %4354 = vmatprep.subr.bf16.mxu1 %v4683_v0 }
 0x607   :  { %4129 = vmatpush3.bf16.msra.mxu0 %v4574_v46  ;;  %4355 = vmatpush3.bf16.msra.mxu1 %v4576_v48 }
 0x608   :  { %4130 = vmatprep.subr.bf16.mxu0 %v4575_v47  ;;  %4356 = vmatprep.subr.bf16.mxu1 %v4683_v0 }
 0x60b   :  { %4131 = vmatpush3.bf16.msra.mxu0 %v4577_v49  ;;  %4357 = vmatpush3.bf16.msra.mxu1 %v4579_v51 }
 0x60c   :  { %4132 = vmatprep.subr.bf16.mxu0 %v4578_v50  ;;  %4358 = vmatprep.subr.bf16.mxu1 %v4683_v0 }
 0x60f   :  { %4133 = vmatpush3.bf16.msra.mxu0 %v4580_v52  ;;  %4359 = vmatpush3.bf16.msra.mxu1 %v4582_v54 }
 0x610   :  { %4134 = vmatprep.subr.bf16.mxu0 %v4581_v53  ;;  %4360 = vmatprep.subr.bf16.mxu1 %v4683_v0 }
 0x613   :  { %4135 = vmatpush3.bf16.msra.mxu0 %v4583_v55  ;;  %4361 = vmatpush3.bf16.msra.mxu1 %v4585_v57 }
 0x614   :  { %4136 = vmatprep.subr.bf16.mxu0 %v4584_v56  ;;  %4362 = vmatprep.subr.bf16.mxu1 %v4683_v0 }
 0x617   :  { %4137 = vmatpush3.bf16.msra.mxu0 %v4586_v58  ;;  %4363 = vmatpush3.bf16.msra.mxu1 %v4588_v60  ;;  %v4590_v60 = vld [vmem:[#allocation3 + $0x580] sm:$0xff]  }
 0x618   :  { %4138 = vmatprep.subr.bf16.mxu0 %v4587_v59  ;;  %4368 = vmatprep.subr.bf16.mxu1 %v4683_v0 }
 0x61b   :  { %4139 = vmatpush3.bf16.msra.mxu0 %v4589_v61  ;;  %v4591_v61 = vld [vmem:[#allocation3 + $0x5c0] sm:$0xff]  }
 0x61c   :  { %4155 = vmatprep.subr.bf16.mxu0 %v4590_v60 }
 0x6cd   :  { %v2528_v62 = vpop.f32.mrb[24].mxu1 }
 0x6ce   :  { %v4346_v63 = vpop.f32.mrb[25].mxu1 }
 0x6cf   :  { %v2531_v1 = vpop.f32.mrb[26].mxu1  ;;  %v4593_v63 = vld [vmem:[#allocation3 + $0x588] sm:$0xff]  }
 0x6d0   :  { %v4347_v13 = vpop.f32.mrb[27].mxu1  ;;  %v4594_v1 = vld [vmem:[#allocation3 + $0x5c8] sm:$0xff]  }
 0x6d1   :  { %v4109_v2 = vpop.f32.mrb[36].mxu0  ;;  %v4596_v13 = vld [vmem:[#allocation3 + $0x590] sm:$0xff]  }
 0x6d2   :  { %v4110_v6 = vpop.f32.mrb[37].mxu0 }
 0x6d3   :  { %v4111_v7 = vadd.f32 %v4110_v6, %v4109_v2  ;;  %v4112_v8 = vpop.f32.mrb[38].mxu0  ;;  %v4595_v2 = vld [vmem:[#allocation3 + $0x548] sm:$0xff]   ;;  %v4598_v6 = vld [vmem:[#allocation3 + $0x550] sm:$0xff]  }
 0x6d4   :  { %v4113_v9 = vpop.f32.mrb[39].mxu0  ;;  %v4600_v8 = vld [vmem:[#allocation3 + $0x5d8] sm:$0xff]  }
 0x6d5   :  { %v2489_v10 = vadd.f32 %v4111_v7, %v3772_v5  ;;  %v4597_v5 = vld [vmem:[#allocation3 + $0x5d0] sm:$0xff]   ;;  %v4599_v7 = vld [vmem:[#allocation3 + $0x598] sm:$0xff]  }
 0x6d6   :  { %v4601_v9 = vld [vmem:[#allocation3 + $0x558] sm:$0xff]  }
 0x6d7   :  { %v2529_v11 = vadd.f32 %v2528_v62, %v2489_v10  ;;  %v4592_v62 = vld [vmem:[#allocation3 + $0x540] sm:$0xff]  }
 0x6d8   :  { %v4602_v10 = vld [vmem:[#allocation3 + $0x5a0] sm:$0xff]  }
 0x6d9   :  { %v2535_v12 = vcombine.high %v2529_v11, %v2529_v11  ;;  %v2537_v14 = vadd.f32 %v2529_v11, %v4916_v4  ;;  %v3802_v4 = vld [vmem:[%s5108_s6 + $0x6] ss:$0 sm:$0xff]  ;;  %v4603_v11 = vld [vmem:[#allocation3 + $0x5e0] sm:$0xff]  }
 0x6db   :  { %v2538_v15 = vadd.f32 %v2535_v12, %v4922_v3  ;;  %2539 = vst [vmem:[#allocation2 + $0x1] sm:$0xf] %v2537_v14  ;;  %v4604_v12 = vld [vmem:[#allocation3 + $0x560] sm:$0xff]   ;;  %v4605_v14 = vld [vmem:[#allocation3 + $0x5a8] sm:$0xff]  }
 0x6dd   :  { %2540 = vst [vmem:[#allocation2 + $0x19] sm:$0xf] %v2538_v15  ;;  %v4606_v15 = vld [vmem:[#allocation3 + $0x5e8] sm:$0xff]  }
 0x6e2   :  { %v2541_v17 = vld [vmem:[#allocation2 + $0x1] ss:$2 sm:$0x3]  ;;  %v2543_v18 = vld [vmem:[#allocation2 + $0x2] ss:$2 sm:$0x3] }
 0x6e3   :  { %v2545_v19 = vld [vmem:[#allocation2 + $0x3] ss:$2 sm:$0x3]  ;;  %v2547_v21 = vmax.f32 %v2541_v17, %v2543_v18  ;;  %v4607_v17 = vld [vmem:[#allocation3 + $0x568] sm:$0xff]  }
 0x6e4   :  { %v2542_v23 = vld [vmem:[#allocation2 + $0x19] ss:$2 sm:$0x3]  ;;  %v2544_v24 = vld [vmem:[#allocation2 + $0x1a] ss:$2 sm:$0x3] }
 0x6e5   :  { %2551 = vst [vmem:[#allocation2 + $0x3] sm:$0x1] %v4683_v0  ;;  %v2546_v25 = vld [vmem:[#allocation2 + $0x1b] ss:$2 sm:$0x3]  ;;  %v2548_v26 = vmax.f32 %v2542_v23, %v2544_v24  ;;  %v4981_v27 = vmax.f32 %v2547_v21, %v2545_v19  ;;  %v4608_v18 = vld [vmem:[#allocation3 + $0x5b0] sm:$0xff]  }
 0x6e6   :  { %2552 = vst [vmem:[#allocation2 + $0x1b] sm:$0x1] %v4683_v0  ;;  %v4609_v19 = vld [vmem:[#allocation3 + $0x5f0] sm:$0xff]   ;;  %v4612_v23 = vld [vmem:[#allocation3 + $0x5f8] sm:$0xff]  }
 0x6e7   :  { %v4987_v3 = vmax.f32 %v2548_v26, %v2546_v25  ;;  %v2561_v28 = vmul.f32 %v3800_v22, %v4981_v27  ;;  %v4610_v21 = vld [vmem:[#allocation3 + $0x570] sm:$0xff]   ;;  %v4613_v24 = vld [vmem:[#allocation3 + $0x578] sm:$0xff]  }
 0x6e8   :  { %v4614_v25 = vld [vmem:[%s5109_s7 + $0x40] sm:$0xff]  }
 0x6e9   :  { %v2562_v29 = vmul.f32 %v3800_v22, %v4987_v3  ;;  %v2571_v30 = vadd.f32 %v3802_v4, %v2561_v28  ;;  %v4611_v22 = vld [vmem:[#allocation3 + $0x5b8] sm:$0xff]  }
 0x6eb   :  { %v2572_v33 = vadd.f32 %v3802_v4, %v2562_v29  ;;  %v2573_v34 = vmax.f32 %v2571_v30, 0.0  ;;  %v3806_v29 = vld [vmem:[%s5106_s4 + $0x6] ss:$0 sm:$0xff] }
 0x6ed   :  { %v2574_v35 = vmax.f32 %v2572_v33, 0.0  ;;  %2626 = vst [vmem:[#allocation2 + $0x1] sm:$0x3] %v2573_v34 }
 0x6ef   :  { %2627 = vst [vmem:[#allocation2 + $0x19] sm:$0x3] %v2574_v35 }
 0x6f4   :  { %v2628_v38 = vld [vmem:[#allocation2] sm:$0x3]  ;;  %v2634_v39 = vld [vmem:[#allocation2 + $0x2] sm:$0x3] }
 0x6f5   :  { %v2636_v40 = vpack.c.bf16 %v2634_v39, %v2634_v39  ;;  %v3804_v41 = vpack.c.bf16 %v2573_v34, %v2628_v38  ;;  %v3832_v38 = vld [vmem:[%s5107_s5 + $0x7] ss:$0 sm:$0xff] }
 0x6f6   :  { %v2629_v42 = vld [vmem:[#allocation2 + $0x18] sm:$0x3]  ;;  %v2635_v43 = vld [vmem:[#allocation2 + $0x1a] sm:$0x3] }
 0x6f7   :  { %v2637_v44 = vpack.c.bf16 %v2635_v43, %v2635_v43  ;;  %v2651_v45 = vrot.slane %v3804_v41, %v4992_v37  ;;  %v2658_v46 = vrot.slane %v2636_v40, %v4992_v37  ;;  %v3805_v47 = vpack.c.bf16 %v2574_v35, %v2629_v42  ;;  %v3834_v40 = vld [vmem:[%s5108_s6 + $0x7] ss:$0 sm:$0xff] }
 0x6f9   :  { %v2659_v48 = vcombine.low %v2651_v45, %v2658_v46  ;;  %v2674_v49 = vrot.slane %v3805_v47, %v4992_v37  ;;  %v2681_v50 = vrot.slane %v2637_v44, %v4992_v37 }
 0x6fb   :  { %v2682_v51 = vcombine.low %v2674_v49, %v2681_v50  ;;  %v2666_v52 = vrot.slane %v2659_v48, %v4992_v37 }
 0x6fd   :  { %v2689_v53 = vrot.slane %v2682_v51, %v4992_v37 }
 0x6ff   :  { %v2696_v54 = vcombine.low %v2666_v52, %v2689_v53 }
 0x701   :  { %v2703_v55 = vrot.slane %v2696_v54, %v4992_v37 }
 0x703   :  { %v2704_v56 = vcombine.high %v2703_v55, %v2703_v55  ;;  %v2711_v57 = vrot.slane %v2703_v55, %v4992_v37 }
 0x705   :  { %v2718_v58 = vrot.slane %v2704_v56, %v4992_v37  ;;  %v2719_v59 = vcombine.high %v2711_v57, %v2711_v57 }
 0x707   :  { %2899 = vmatprep.mubr.bf16.mxu0 %v2718_v58  ;;  %4365 = vmatmul.mubr.bf16.vlgmr.msra.gmra.mrb[28].mxu1 %v2719_v59 }
 0x708   :  { %2900 = vmatmul.mubr.bf16.vlgmr.msra.gmra.mrb[40].mxu0 %v2711_v57  ;;  %4384 = vmatprep.mubr.msk.bf16.mxu1 %vm4684_vm0, %v4683_v0 }
 0x709   :  { %4369 = vmatpush3.bf16.msra.mxu1 %v4591_v61  ;;  %4156 = vmatpush3.bf16.msra.mxu0 %v4592_v62 }
 0x70a   :  { %4370 = vmatprep.subr.bf16.mxu1 %v4683_v0  ;;  %4157 = vmatprep.subr.bf16.mxu0 %v4593_v63 }
 0x70d   :  { %4371 = vmatpush3.bf16.msra.mxu1 %v4594_v1  ;;  %4158 = vmatpush3.bf16.msra.mxu0 %v4595_v2 }
 0x70e   :  { %4372 = vmatprep.subr.bf16.mxu1 %v4683_v0  ;;  %4159 = vmatprep.subr.bf16.mxu0 %v4596_v13 }
 0x711   :  { %4373 = vmatpush3.bf16.msra.mxu1 %v4597_v5  ;;  %4160 = vmatpush3.bf16.msra.mxu0 %v4598_v6 }
 0x712   :  { %4374 = vmatprep.subr.bf16.mxu1 %v4683_v0  ;;  %4161 = vmatprep.subr.bf16.mxu0 %v4599_v7 }
 0x715   :  { %4375 = vmatpush3.bf16.msra.mxu1 %v4600_v8  ;;  %4162 = vmatpush3.bf16.msra.mxu0 %v4601_v9  ;;  %v4615_v8 = vld [vmem:[%s5109_s7] sm:$0xff]   ;;  %v4616_v9 = vld [vmem:[%s5109_s7 + $0x48] sm:$0xff]  }
 0x716   :  { %4376 = vmatprep.subr.bf16.mxu1 %v4683_v0  ;;  %4163 = vmatprep.subr.bf16.mxu0 %v4602_v10  ;;  %v4617_v10 = vld [vmem:[%s5109_s7 + $0x8] sm:$0xff]  }
 0x719   :  { %4377 = vmatpush3.bf16.msra.mxu1 %v4603_v11  ;;  %4164 = vmatpush3.bf16.msra.mxu0 %v4604_v12  ;;  %v4619_v11 = vld [vmem:[%s5109_s7 + $0x10] sm:$0xff]   ;;  %v4620_v12 = vld [vmem:[%s5109_s7 + $0x58] sm:$0xff]  }
 0x71a   :  { %4378 = vmatprep.subr.bf16.mxu1 %v4683_v0  ;;  %4165 = vmatprep.subr.bf16.mxu0 %v4605_v14  ;;  %v4621_v14 = vld [vmem:[%s5109_s7 + $0x18] sm:$0xff]  }
 0x71d   :  { %4379 = vmatpush3.bf16.msra.mxu1 %v4606_v15  ;;  %4166 = vmatpush3.bf16.msra.mxu0 %v4607_v17  ;;  %v4622_v15 = vld [vmem:[%s5109_s7 + $0x60] sm:$0xff]  }
 0x71e   :  { %4380 = vmatprep.subr.bf16.mxu1 %v4683_v0  ;;  %4167 = vmatprep.subr.bf16.mxu0 %v4608_v18  ;;  %v4623_v17 = vld [vmem:[%s5109_s7 + $0x20] sm:$0xff]   ;;  %v4624_v18 = vld [vmem:[%s5109_s7 + $0x68] sm:$0xff]  }
 0x721   :  { %4381 = vmatpush3.bf16.msra.mxu1 %v4609_v19  ;;  %4168 = vmatpush3.bf16.msra.mxu0 %v4610_v21  ;;  %v4625_v19 = vld [vmem:[%s5109_s7 + $0x28] sm:$0xff]   ;;  %v4626_v21 = vld [vmem:[%s5109_s7 + $0x70] sm:$0xff]  }
 0x722   :  { %4382 = vmatprep.subr.bf16.mxu1 %v4683_v0  ;;  %4169 = vmatprep.subr.bf16.mxu0 %v4611_v22  ;;  %v4627_v22 = vld [vmem:[%s5109_s7 + $0x30] sm:$0xff]  }
 0x725   :  { %4383 = vmatpush3.bf16.msra.mxu1 %v4612_v23  ;;  %4170 = vmatpush3.bf16.msra.mxu0 %v4613_v24  ;;  %v4628_v23 = vld [vmem:[%s5109_s7 + $0x78] sm:$0xff]  }
 0x726   :  { %4186 = vmatprep.subr.bf16.mxu0 %v4614_v25  ;;  %v4629_v24 = vld [vmem:[%s5109_s7 + $0x38] sm:$0xff]  }
 0x7da   :  { %v2941_v26 = vpop.f32.mrb[28].mxu1 }
 0x7db   :  { %v4140_v4 = vpop.f32.mrb[40].mxu0  ;;  %v4366_v28 = vpop.f32.mrb[29].mxu1 }
 0x7dc   :  { %v4141_v30 = vpop.f32.mrb[41].mxu0  ;;  %v2944_v31 = vpop.f32.mrb[30].mxu1  ;;  %v3838_v28 = vld [vmem:[%s5106_s4 + $0x7] ss:$0 sm:$0xff] }
 0x7dd   :  { %v4142_v32 = vadd.f32 %v4141_v30, %v4140_v4  ;;  %v4143_v0 = vpop.f32.mrb[42].mxu0  ;;  %v4367_v33 = vpop.f32.mrb[31].mxu1 }
 0x7de   :  { %v4144_v34 = vpop.f32.mrb[43].mxu0 }
 0x7df   :  { %v2902_v35 = vadd.f32 %v4142_v32, %v3806_v29 }
 0x7e1   :  { %v2942_v36 = vadd.f32 %v2941_v26, %v2902_v35 }
 0x7e3   :  { %v2954_v39 = vrot.slane %v2942_v36, %v4929_v20 }
 0x7e5   :  { %v2955_v41 = vcombine.high %v2954_v39, %v2954_v39  ;;  %v2966_v42 = vmul.f32 %v3832_v38, %v2954_v39 }
 0x7e7   :  { %v2967_v43 = vmul.f32 %v3832_v38, %v2955_v41  ;;  %v2976_v44 = vadd.f32 %v3834_v40, %v2966_v42  ;;  %v3380_v41 = vsub.s32 1, %v4926_v16 }
 0x7e9   :  { %v2977_v45 = vadd.f32 %v3834_v40, %v2967_v43  ;;  %v2978_v46 = vmax.f32 %v2976_v44, 0.0  ;;  %v3369_v40 = vsub.s32 0, %v4926_v16 }
 0x7eb   :  { %v2979_v47 = vmax.f32 %v2977_v45, 0.0  ;;  %3031 = vst [vmem:[#allocation2 + $0x1] sm:$0x3] %v2978_v46 }
 0x7ed   :  { %3032 = vst [vmem:[#allocation2 + $0x19] sm:$0x3] %v2979_v47 }
 0x7f2   :  { %v3033_v48 = vld [vmem:[#allocation2] sm:$0x3]  ;;  %v3039_v49 = vld [vmem:[#allocation2 + $0x2] sm:$0x3] }
 0x7f3   :  { %v3836_v50 = vpack.c.bf16 %v2978_v46, %v3033_v48  ;;  %v3041_v51 = vpack.c.bf16 %v3039_v49, %v3039_v49 }
 0x7f4   :  { %v3034_v52 = vld [vmem:[#allocation2 + $0x18] sm:$0x3]  ;;  %v3040_v53 = vld [vmem:[#allocation2 + $0x1a] sm:$0x3] }
 0x7f5   :  { %v3056_v54 = vrot.slane %v3836_v50, %v4992_v37  ;;  %v3837_v55 = vpack.c.bf16 %v2979_v47, %v3034_v52  ;;  %v3042_v56 = vpack.c.bf16 %v3040_v53, %v3040_v53  ;;  %v3063_v57 = vrot.slane %v3041_v51, %v4992_v37 }
 0x7f7   :  { %v3064_v58 = vcombine.low %v3056_v54, %v3063_v57  ;;  %v3079_v59 = vrot.slane %v3837_v55, %v4992_v37  ;;  %v3086_v60 = vrot.slane %v3042_v56, %v4992_v37 }
 0x7f9   :  { %v3087_v61 = vcombine.low %v3079_v59, %v3086_v60  ;;  %v3071_v62 = vrot.slane %v3064_v58, %v4992_v37 }
 0x7fb   :  { %v3094_v63 = vrot.slane %v3087_v61, %v4992_v37 }
 0x7fd   :  { %v3101_v1 = vcombine.low %v3071_v62, %v3094_v63 }
 0x7ff   :  { %v3108_v2 = vrot.slane %v3101_v1, %v4992_v37 }
 0x801   :  { %v3109_v13 = vcombine.high %v3108_v2, %v3108_v2  ;;  %v3116_v5 = vrot.slane %v3108_v2, %v4992_v37 }
 0x803   :  { %v3123_v6 = vrot.slane %v3109_v13, %v4992_v37  ;;  %v3124_v7 = vcombine.high %v3116_v5, %v3116_v5  ;;  %v4618_v37 = vld [vmem:[%s5109_s7 + $0x50] sm:$0xff]  }
 0x805   :  { %3304 = vmatprep.mubr.bf16.mxu0 %v3123_v6  ;;  %4385 = vmatmul.mubr.bf16.vlgmr.msra.gmra.mrb[32].mxu1 %v3124_v7 }
 0x806   :  { %3305 = vmatmul.mubr.bf16.vlgmr.msra.gmra.mrb[44].mxu0 %v3116_v5 }
 0x807   :  { %4187 = vmatpush3.bf16.msra.mxu0 %v4615_v8 }
 0x808   :  { %4188 = vmatprep.subr.bf16.mxu0 %v4616_v9 }
 0x80b   :  { %4189 = vmatpush3.bf16.msra.mxu0 %v4617_v10 }
 0x80c   :  { %4190 = vmatprep.subr.bf16.mxu0 %v4618_v37 }
 0x80f   :  { %4191 = vmatpush3.bf16.msra.mxu0 %v4619_v11 }
 0x810   :  { %4192 = vmatprep.subr.bf16.mxu0 %v4620_v12 }
 0x813   :  { %4193 = vmatpush3.bf16.msra.mxu0 %v4621_v14 }
 0x814   :  { %4194 = vmatprep.subr.bf16.mxu0 %v4622_v15 }
 0x817   :  { %4195 = vmatpush3.bf16.msra.mxu0 %v4623_v17 }
 0x818   :  { %4196 = vmatprep.subr.bf16.mxu0 %v4624_v18 }
 0x81b   :  { %4197 = vmatpush3.bf16.msra.mxu0 %v4625_v19 }
 0x81c   :  { %4198 = vmatprep.subr.bf16.mxu0 %v4626_v21 }
 0x81f   :  { %4199 = vmatpush3.bf16.msra.mxu0 %v4627_v22 }
 0x820   :  { %4200 = vmatprep.subr.bf16.mxu0 %v4628_v23 }
 0x823   :  { %4201 = vmatpush3.bf16.msra.mxu0 %v4629_v24 }
 0x8d8   :  { %v3346_v25 = vpop.f32.mrb[32].mxu1 }
 0x8d9   :  { %v4171_v26 = vpop.f32.mrb[44].mxu0  ;;  %v4386_v4 = vpop.f32.mrb[33].mxu1 }
 0x8da   :  { %v4172_v29 = vpop.f32.mrb[45].mxu0  ;;  %v3349_v30 = vpop.f32.mrb[34].mxu1 }
 0x8db   :  { %v4173_v31 = vadd.f32 %v4172_v29, %v4171_v26  ;;  %v4174_v32 = vpop.f32.mrb[46].mxu0  ;;  %v4387_v0 = vpop.f32.mrb[35].mxu1 }
 0x8dc   :  { %v4175_v33 = vpop.f32.mrb[47].mxu0 }
 0x8dd   :  { %v3307_v34 = vadd.f32 %v4173_v31, %v3838_v28 }
 0x8df   :  { %v3347_v35 = vadd.f32 %v3346_v25, %v3307_v34 }
 0x8e1   :  { %v3359_v36 = vrot.slane %v3347_v35, %v4929_v20 }
 0x8e3   :  { %v3360_v38 = vcombine.high %v3359_v36, %v3359_v36  ;;  %v3363_v39 = vadd.f32 %v3359_v36, %v4981_v27  ;;  %v3863_v27 = vld [vmem:[%s5110_s8] ss:$0 sm:$0xff] }
 0x8e5   :  { %v3364_v42 = vadd.f32 %v3360_v38, %v4987_v3  ;;  %v3370_v43 = vrot.slane %v3363_v39, %v3369_v40  ;;  %v3381_v44 = vrot.slane %v3363_v39, %v3380_v41 }
 0x8e7   :  { %v3385_v45 = vrot.slane %v3364_v42, %v3380_v41  ;;  %v3374_v46 = vrot.slane %v3364_v42, %v3369_v40 }
 0x8e9   :  { %v3386_v47 = vsel %vm3375_vm1, %v3385_v45, %v3381_v44  ;;  %v3376_v48 = vsel %vm3375_vm1, %v3374_v46, %v3370_v43 }
 0x8ea   :  { %v3389_v49 = vpack.c.bf16 %v3386_v47, %v3386_v47  ;;  %v3388_v50 = vpack.c.bf16 %v3376_v48, %v3376_v48 }
 0x8ec   :  { %3557 = vmatprep.mubr.bf16.mxu0 %v3389_v49 }
 0x8ed   :  { %3558 = vmatmul.mubr.bf16.vlgmr.msra.gmra.mrb[48].mxu0 %v3388_v50 }
 0x9c0   :  { %v4202_v20 = vpop.f32.mrb[48].mxu0 }
 0x9c1   :  { %v4203_v51 = vpop.f32.mrb[49].mxu0 }
 0x9c2   :  { %v4204_v16 = vadd.f32 %v4203_v51, %v4202_v20  ;;  %v4205_v3 = vpop.f32.mrb[50].mxu0 }
 0x9c3   :  { %v4206_v52 = vpop.f32.mrb[51].mxu0 }
 0x9c4   :  { %v3560_v53 = vadd.f32 %v4204_v16, %v3863_v27 }
 0x9c6   :  { %3565 = vst [vmem:[#allocation6] sm:$0x3] %v3560_v53 }
 0x9c7   :  { %4665 = shalt.err (!%p4662_p12)
}
 0x9c8   :  { %s4666_s8 = scalar_lea.hbm %s5111_s9, 32 }
 0x9c9   :  { %p4667_p13 = scmp.ne.s32.totalorder %s5111_s9, %s4666_s8  ;;  %p4670_p0 = scmp.lt.u32.totalorder %s4666_s8, %s5111_s9 }
 0x9cb   :  { %p4672_p1 = pnand %p4670_p0, %p4667_p13 }
 0x9cd   :  { %4675 = shalt.err (!%p4672_p1)
}
 0x9ce   :  { %3575 = dma.vmem_to_hbm [thread:$0]  %s3573_s11, 32, %s5111_s9, [#allocation5]  }
 0x9cf   :  { %4678 = dma.done.wait [#allocation5], 32  }
 0x9d0   :  { %4679 = vsyncadd [#allocation5], 4294967264 }
 0x9d1   :  { %3579 = vsyncpa [#allocation4], 1 }
 0x9d2   :  { %3580 = vsyncpa [#allocation5], 1 }

</bundles_post_ra>
